<compile_context>
chip_gen: v7x
topology: tpu7x:2x2x1
jax: 0.10.0
libtpu: 0.0.40
codegen_flags: <defaults>
</compile_context>

<pallas_src>
import jax
import jax.numpy as jnp
from jax import lax
from jax.experimental import pallas as pl
from jax.experimental.pallas import tpu as pltpu


def rcnn_kernel(emb_ref, mask_ref,                 # (B,S,E) f32, (B,S,1) f32
                wih_cat_ref,                        # (E, 8H) bf16  [W_ih_f | W_ih_b]
                whh_f_ref, whh_b_ref,               # (H, 4H) bf16 each
                b_f_ref, b_b_ref,                   # (1, 4H) f32 each (b_ih + b_hh)
                w1_ref, b1_ref,                     # (2H+E, H) bf16, (1, H) f32
                gamma_ref, beta_ref,                # (1, H) f32 BatchNorm affine
                w2_ref, b2_ref,                     # (H, nc) bf16, (1, nc) f32
                out_ref):                           # (B, nc) f32 logits
    B, S, E = emb_ref.shape
    H = whh_f_ref.shape[0]
    H4 = 4 * H

    # ---- masked embeddings (masked_fill fused into the kernel) ----
    masked = emb_ref[...] * mask_ref[...]                       # (B,S,E)

    # ---- pooled tanh(embedding) over time (tanh commutes with elementwise max) ----
    m_e = jnp.max(jnp.tanh(masked), axis=1)                     # (B,E)

    # ---- hoisted input projection for BOTH LSTM directions: one MXU matmul ----
    xw = jnp.dot(masked.reshape(B * S, E).astype(jnp.bfloat16),
                 wih_cat_ref[...],
                 preferred_element_type=jnp.float32)            # (B*S, 8H) f32
    xw = xw.reshape(B, S, 2 * H4)

    def gate_act(gates):
        # Apply both nonlinearities on the full (B,4H) tile, select per lane
        # (lanes [2H,3H) are the g-gate -> tanh, the rest -> sigmoid).
        lane = lax.broadcasted_iota(jnp.int32, gates.shape, 1)
        is_g = jnp.logical_and(lane >= 2 * H, lane < 3 * H)
        return jnp.where(is_g, jnp.tanh(gates), jax.nn.sigmoid(gates))

    def lstm_step(xw_t, h, c, whh_ref, b_ref):
        gates = (xw_t
                 + jnp.dot(h.astype(jnp.bfloat16), whh_ref[...],
                           preferred_element_type=jnp.float32)
                 + b_ref[...])                                  # (B,4H) f32
        a = gate_act(gates)
        i_g = a[:, 0:H]
        f_g = a[:, H:2 * H]
        g_g = a[:, 2 * H:3 * H]
        o_g = a[:, 3 * H:4 * H]
        c_new = f_g * c + i_g * g_g
        h_new = o_g * jnp.tanh(c_new)
        return h_new, c_new

    zeros = jnp.zeros((B, H), jnp.float32)
    h_f, c_f = zeros, zeros
    h_b, c_b = zeros, zeros
    m_hf = jnp.full((B, H), -jnp.inf, jnp.float32)
    m_hb = jnp.full((B, H), -jnp.inf, jnp.float32)

    # ---- fused, fully-unrolled bidirectional recurrence with running maxes ----
    for i in range(S):
        tb = S - 1 - i
        h_f, c_f = lstm_step(xw[:, i, 0:H4], h_f, c_f, whh_f_ref, b_f_ref)
        h_b, c_b = lstm_step(xw[:, tb, H4:2 * H4], h_b, c_b, whh_b_ref, b_b_ref)
        m_hf = jnp.maximum(m_hf, jnp.tanh(h_f))
        m_hb = jnp.maximum(m_hb, jnp.tanh(h_b))

    # Feature order matches torch.cat((lstm_out, embed), 2): [h_fwd | h_bwd | emb]
    feat = jnp.concatenate([m_hf, m_hb, m_e], axis=1)           # (B, 2H+E)

    # ---- FC head: Linear -> BatchNorm1d (training-mode batch stats) -> ReLU -> Linear ----
    h1 = (jnp.dot(feat.astype(jnp.bfloat16), w1_ref[...],
                  preferred_element_type=jnp.float32) + b1_ref[...])
    mu = jnp.mean(h1, axis=0, keepdims=True)
    var = jnp.mean((h1 - mu) ** 2, axis=0, keepdims=True)       # biased var, as PyTorch BN
    h1 = (h1 - mu) * lax.rsqrt(var + 1e-5) * gamma_ref[...] + beta_ref[...]
    h1 = jnp.maximum(h1, 0.0)
    out_ref[...] = (jnp.dot(h1.astype(jnp.bfloat16), w2_ref[...],
                            preferred_element_type=jnp.float32) + b2_ref[...])


@jax.jit
def textrcnn_forward(x, mask, params):
    # Embedding lookup stays in XLA glue; masking/transposes are fused into the kernel.
    emb = params["embed"][x].astype(jnp.float32)                # (B, S, E)
    mask3 = mask.astype(jnp.float32)[:, :, None]                # (B, S, 1)

    B, S, E = emb.shape
    H = params["whh_f_T"].shape[0]
    nc = params["b2"].shape[-1]

    args = (emb, mask3,
            params["wih_cat"],
            params["whh_f_T"], params["whh_b_T"],
            params["b_f"], params["b_b"],
            params["w1_T"], params["b1"],
            params["gamma"], params["beta"],
            params["w2_T"], params["b2"])

    flops = (2 * B * S * E * (8 * H)            # hoisted input projection
             + 2 * S * (2 * B * H * (4 * H))    # recurrent h @ W_hh, both dirs
             + 2 * B * (2 * H + E) * H          # fc1
             + 2 * B * H * nc)                  # fc2
    transcendentals = 2 * S * (2 * B * 4 * H + 2 * B * H) + B * S * E
    bytes_accessed = int(sum(int(a.size) * a.dtype.itemsize for a in args)
                         + B * nc * 4)

    return pl.pallas_call(
        rcnn_kernel,
        out_shape=jax.ShapeDtypeStruct((B, nc), jnp.float32),
        in_specs=[pl.BlockSpec(memory_space=pltpu.MemorySpace.VMEM)] * len(args),
        out_specs=pl.BlockSpec(memory_space=pltpu.MemorySpace.VMEM),
        cost_estimate=pl.CostEstimate(flops=flops,
                                      transcendentals=transcendentals,
                                      bytes_accessed=bytes_accessed),
    )(*args)


def init_params(key, vocab_size, embed_dim, hidden, num_classes):
    ks = jax.random.split(key, 12)
    E, H = embed_dim, hidden
    u = lambda k, shape, s: jax.random.uniform(k, shape, jnp.float32, -s, s)

    embed = u(ks[0], (vocab_size, E), 1.0)
    s_l = 1.0 / jnp.sqrt(H)
    # LSTM: b = b_ih + b_hh folded together; weights stored pre-transposed.
    wih_f_T = u(ks[1], (4 * H, E), s_l).T                       # (E, 4H)
    whh_f_T = u(ks[2], (4 * H, H), s_l).T                       # (H, 4H)
    b_f = (u(ks[3], (4 * H,), s_l) + u(ks[4], (4 * H,), s_l)).reshape(1, 4 * H)
    wih_b_T = u(ks[5], (4 * H, E), s_l).T
    whh_b_T = u(ks[6], (4 * H, H), s_l).T
    b_b = (u(ks[7], (4 * H,), s_l) + u(ks[8], (4 * H,), s_l)).reshape(1, 4 * H)

    fin1 = 2 * H + E
    w1_T = u(ks[9], (H, fin1), 1.0 / jnp.sqrt(fin1)).T          # (2H+E, H)
    b1 = u(ks[10], (H,), 1.0 / jnp.sqrt(fin1)).reshape(1, H)
    gamma = jnp.ones((1, H), jnp.float32)
    beta = jnp.zeros((1, H), jnp.float32)
    w2_T = u(ks[11], (num_classes, H), 1.0 / jnp.sqrt(H)).T     # (H, nc)
    b2 = jnp.zeros((1, num_classes), jnp.float32)

    # bf16 MXU operands; both directions' input projections packed side by side.
    wih_cat = jnp.concatenate([wih_f_T, wih_b_T], axis=1).astype(jnp.bfloat16)  # (E, 8H)

    return dict(embed=embed,
                wih_cat=wih_cat,
                whh_f_T=whh_f_T.astype(jnp.bfloat16),
                whh_b_T=whh_b_T.astype(jnp.bfloat16),
                b_f=b_f, b_b=b_b,
                w1_T=w1_T.astype(jnp.bfloat16), b1=b1,
                gamma=gamma, beta=beta,
                w2_T=w2_T.astype(jnp.bfloat16), b2=b2)


if __name__ == "__main__":
    # Small config consistent with the module's forward:
    vocab_size, num_classes, hidden, embed_dim, seq_len, batch = 50, 4, 32, 16, 8, 2

    key = jax.random.PRNGKey(0)
    k_tok, k_mask, k_par = jax.random.split(key, 3)

    x = jax.random.randint(k_tok, (batch, seq_len), 0, vocab_size, jnp.int32)
    mask = (jax.random.uniform(k_mask, (batch, seq_len)) > 0.25).astype(jnp.int32)
    params = init_params(k_par, vocab_size, embed_dim, hidden, num_classes)

    logits = textrcnn_forward(x, mask, params)
    jax.block_until_ready(logits)
    assert logits.shape == (batch, num_classes)
    assert bool(jnp.all(jnp.isfinite(logits)))
    print("KERNEL_OK")
</pallas_src>

<mosaic_0001>
module attributes {stable_mosaic.version = 11 : i64} {
  func.func @rcnn_kernel(%arg0: memref<2x8x16xf32, #tpu.memory_space<vmem>>, %arg1: memref<2x8x1xf32, #tpu.memory_space<vmem>>, %arg2: memref<16x256xbf16, #tpu.memory_space<vmem>>, %arg3: memref<32x128xbf16, #tpu.memory_space<vmem>>, %arg4: memref<32x128xbf16, #tpu.memory_space<vmem>>, %arg5: memref<1x128xf32, #tpu.memory_space<vmem>>, %arg6: memref<1x128xf32, #tpu.memory_space<vmem>>, %arg7: memref<80x32xbf16, #tpu.memory_space<vmem>>, %arg8: memref<1x32xf32, #tpu.memory_space<vmem>>, %arg9: memref<1x32xf32, #tpu.memory_space<vmem>>, %arg10: memref<1x32xf32, #tpu.memory_space<vmem>>, %arg11: memref<32x4xbf16, #tpu.memory_space<vmem>>, %arg12: memref<1x4xf32, #tpu.memory_space<vmem>>, %arg13: memref<2x4xf32, #tpu.memory_space<vmem>>) attributes {dimension_semantics = [], scalar_prefetch = 0 : i64, scratch_operands = 0 : i64, tpu.core_type = #tpu.core_type<tc>} {
    %c0 = arith.constant 0 : index
    %c0_0 = arith.constant 0 : index
    %c0_1 = arith.constant 0 : index
    %0 = vector.load %arg0[%c0, %c0_0, %c0_1] : memref<2x8x16xf32, #tpu.memory_space<vmem>>, vector<2x8x16xf32>
    %c0_2 = arith.constant 0 : index
    %c0_3 = arith.constant 0 : index
    %c0_4 = arith.constant 0 : index
    %1 = vector.load %arg1[%c0_2, %c0_3, %c0_4] : memref<2x8x1xf32, #tpu.memory_space<vmem>>, vector<2x8x1xf32>
    %2 = vector.broadcast %1 : vector<2x8x1xf32> to vector<2x8x16xf32>
    %3 = arith.mulf %0, %2 : vector<2x8x16xf32>
    %4 = math.tanh %3 : vector<2x8x16xf32>
    %cst = arith.constant dense<0xFF800000> : vector<2x16xf32>
    %5 = vector.multi_reduction <maximumf>, %4, %cst [1] : vector<2x8x16xf32> to vector<2x16xf32>
    %6 = vector.shape_cast %3 : vector<2x8x16xf32> to vector<16x16xf32>
    %7 = arith.truncf %6 : vector<16x16xf32> to vector<16x16xbf16>
    %c0_5 = arith.constant 0 : index
    %c0_6 = arith.constant 0 : index
    %8 = vector.load %arg2[%c0_5, %c0_6] : memref<16x256xbf16, #tpu.memory_space<vmem>>, vector<16x256xbf16>
    %cst_7 = arith.constant dense<0.000000e+00> : vector<16x256xf32>
    %9 = tpu.matmul %7, %8, %cst_7 {dimension_numbers = #tpu.dot_dimension_numbers<[1], [0], [0], [1], [0, 0, 1, 1], [], []>} : vector<16x16xbf16>, vector<16x256xbf16>, vector<16x256xf32> -> vector<16x256xf32>
    %10 = vector.shape_cast %9 : vector<16x256xf32> to vector<2x8x256xf32>
    %cst_8 = arith.constant 0.000000e+00 : f32
    %11 = vector.broadcast %cst_8 : f32 to vector<2x32xf32>
    %cst_9 = arith.constant 0xFF800000 : f32
    %12 = vector.broadcast %cst_9 : f32 to vector<2x32xf32>
    %cst_10 = arith.constant 0xFF800000 : f32
    %13 = vector.broadcast %cst_10 : f32 to vector<2x32xf32>
    %14 = vector.extract_strided_slice %10 {offsets = [0, 0, 0], sizes = [2, 1, 128], strides = [1, 1, 1]} : vector<2x8x256xf32> to vector<2x1x128xf32>
    %15 = vector.shape_cast %14 : vector<2x1x128xf32> to vector<2x128xf32>
    %16 = arith.truncf %11 : vector<2x32xf32> to vector<2x32xbf16>
    %c0_11 = arith.constant 0 : index
    %c0_12 = arith.constant 0 : index
    %17 = vector.load %arg3[%c0_11, %c0_12] : memref<32x128xbf16, #tpu.memory_space<vmem>>, vector<32x128xbf16>
    %cst_13 = arith.constant dense<0.000000e+00> : vector<2x128xf32>
    %18 = tpu.matmul %16, %17, %cst_13 {dimension_numbers = #tpu.dot_dimension_numbers<[1], [0], [0], [1], [0, 0, 1, 1], [], []>} : vector<2x32xbf16>, vector<32x128xbf16>, vector<2x128xf32> -> vector<2x128xf32>
    %19 = arith.addf %15, %18 : vector<2x128xf32>
    %c0_14 = arith.constant 0 : index
    %c0_15 = arith.constant 0 : index
    %20 = vector.load %arg5[%c0_14, %c0_15] : memref<1x128xf32, #tpu.memory_space<vmem>>, vector<1x128xf32>
    %21 = vector.broadcast %20 : vector<1x128xf32> to vector<2x128xf32>
    %22 = arith.addf %19, %21 : vector<2x128xf32>
    %23 = tpu.iota {dimensions = array<i32: 1>} : vector<2x128xi32>
    %c64_i32 = arith.constant 64 : i32
    %24 = vector.broadcast %c64_i32 : i32 to vector<2x128xi32>
    %25 = arith.cmpi sge, %23, %24 : vector<2x128xi32>
    %c96_i32 = arith.constant 96 : i32
    %26 = vector.broadcast %c96_i32 : i32 to vector<2x128xi32>
    %27 = arith.cmpi slt, %23, %26 : vector<2x128xi32>
    %28 = arith.andi %25, %27 : vector<2x128xi1>
    %29 = math.tanh %22 : vector<2x128xf32>
    %30 = arith.negf %22 : vector<2x128xf32>
    %31 = math.exp %30 : vector<2x128xf32>
    %cst_16 = arith.constant 1.000000e+00 : f32
    %32 = vector.broadcast %cst_16 : f32 to vector<2x128xf32>
    %33 = arith.addf %32, %31 : vector<2x128xf32>
    %34 = arith.divf %32, %33 : vector<2x128xf32>
    %35 = arith.select %28, %29, %34 : vector<2x128xi1>, vector<2x128xf32>
    %36 = vector.extract_strided_slice %35 {offsets = [0, 0], sizes = [2, 32], strides = [1, 1]} : vector<2x128xf32> to vector<2x32xf32>
    %37 = vector.extract_strided_slice %35 {offsets = [0, 32], sizes = [2, 32], strides = [1, 1]} : vector<2x128xf32> to vector<2x32xf32>
    %38 = vector.extract_strided_slice %35 {offsets = [0, 64], sizes = [2, 32], strides = [1, 1]} : vector<2x128xf32> to vector<2x32xf32>
    %39 = vector.extract_strided_slice %35 {offsets = [0, 96], sizes = [2, 32], strides = [1, 1]} : vector<2x128xf32> to vector<2x32xf32>
    %40 = arith.mulf %37, %11 : vector<2x32xf32>
    %41 = arith.mulf %36, %38 : vector<2x32xf32>
    %42 = arith.addf %40, %41 : vector<2x32xf32>
    %43 = math.tanh %42 : vector<2x32xf32>
    %44 = arith.mulf %39, %43 : vector<2x32xf32>
    %45 = vector.extract_strided_slice %10 {offsets = [0, 7, 128], sizes = [2, 1, 128], strides = [1, 1, 1]} : vector<2x8x256xf32> to vector<2x1x128xf32>
    %46 = vector.shape_cast %45 : vector<2x1x128xf32> to vector<2x128xf32>
    %47 = arith.truncf %11 : vector<2x32xf32> to vector<2x32xbf16>
    %c0_17 = arith.constant 0 : index
    %c0_18 = arith.constant 0 : index
    %48 = vector.load %arg4[%c0_17, %c0_18] : memref<32x128xbf16, #tpu.memory_space<vmem>>, vector<32x128xbf16>
    %cst_19 = arith.constant dense<0.000000e+00> : vector<2x128xf32>
    %49 = tpu.matmul %47, %48, %cst_19 {dimension_numbers = #tpu.dot_dimension_numbers<[1], [0], [0], [1], [0, 0, 1, 1], [], []>} : vector<2x32xbf16>, vector<32x128xbf16>, vector<2x128xf32> -> vector<2x128xf32>
    %50 = arith.addf %46, %49 : vector<2x128xf32>
    %c0_20 = arith.constant 0 : index
    %c0_21 = arith.constant 0 : index
    %51 = vector.load %arg6[%c0_20, %c0_21] : memref<1x128xf32, #tpu.memory_space<vmem>>, vector<1x128xf32>
    %52 = vector.broadcast %51 : vector<1x128xf32> to vector<2x128xf32>
    %53 = arith.addf %50, %52 : vector<2x128xf32>
    %54 = tpu.iota {dimensions = array<i32: 1>} : vector<2x128xi32>
    %c64_i32_22 = arith.constant 64 : i32
    %55 = vector.broadcast %c64_i32_22 : i32 to vector<2x128xi32>
    %56 = arith.cmpi sge, %54, %55 : vector<2x128xi32>
    %c96_i32_23 = arith.constant 96 : i32
    %57 = vector.broadcast %c96_i32_23 : i32 to vector<2x128xi32>
    %58 = arith.cmpi slt, %54, %57 : vector<2x128xi32>
    %59 = arith.andi %56, %58 : vector<2x128xi1>
    %60 = math.tanh %53 : vector<2x128xf32>
    %61 = arith.negf %53 : vector<2x128xf32>
    %62 = math.exp %61 : vector<2x128xf32>
    %cst_24 = arith.constant 1.000000e+00 : f32
    %63 = vector.broadcast %cst_24 : f32 to vector<2x128xf32>
    %64 = arith.addf %63, %62 : vector<2x128xf32>
    %65 = arith.divf %63, %64 : vector<2x128xf32>
    %66 = arith.select %59, %60, %65 : vector<2x128xi1>, vector<2x128xf32>
    %67 = vector.extract_strided_slice %66 {offsets = [0, 0], sizes = [2, 32], strides = [1, 1]} : vector<2x128xf32> to vector<2x32xf32>
    %68 = vector.extract_strided_slice %66 {offsets = [0, 32], sizes = [2, 32], strides = [1, 1]} : vector<2x128xf32> to vector<2x32xf32>
    %69 = vector.extract_strided_slice %66 {offsets = [0, 64], sizes = [2, 32], strides = [1, 1]} : vector<2x128xf32> to vector<2x32xf32>
    %70 = vector.extract_strided_slice %66 {offsets = [0, 96], sizes = [2, 32], strides = [1, 1]} : vector<2x128xf32> to vector<2x32xf32>
    %71 = arith.mulf %68, %11 : vector<2x32xf32>
    %72 = arith.mulf %67, %69 : vector<2x32xf32>
    %73 = arith.addf %71, %72 : vector<2x32xf32>
    %74 = math.tanh %73 : vector<2x32xf32>
    %75 = arith.mulf %70, %74 : vector<2x32xf32>
    %76 = math.tanh %44 : vector<2x32xf32>
    %77 = arith.maximumf %12, %76 : vector<2x32xf32>
    %78 = math.tanh %75 : vector<2x32xf32>
    %79 = arith.maximumf %13, %78 : vector<2x32xf32>
    %80 = vector.extract_strided_slice %10 {offsets = [0, 1, 0], sizes = [2, 1, 128], strides = [1, 1, 1]} : vector<2x8x256xf32> to vector<2x1x128xf32>
    %81 = vector.shape_cast %80 : vector<2x1x128xf32> to vector<2x128xf32>
    %82 = arith.truncf %44 : vector<2x32xf32> to vector<2x32xbf16>
    %c0_25 = arith.constant 0 : index
    %c0_26 = arith.constant 0 : index
    %83 = vector.load %arg3[%c0_25, %c0_26] : memref<32x128xbf16, #tpu.memory_space<vmem>>, vector<32x128xbf16>
    %cst_27 = arith.constant dense<0.000000e+00> : vector<2x128xf32>
    %84 = tpu.matmul %82, %83, %cst_27 {dimension_numbers = #tpu.dot_dimension_numbers<[1], [0], [0], [1], [0, 0, 1, 1], [], []>} : vector<2x32xbf16>, vector<32x128xbf16>, vector<2x128xf32> -> vector<2x128xf32>
    %85 = arith.addf %81, %84 : vector<2x128xf32>
    %c0_28 = arith.constant 0 : index
    %c0_29 = arith.constant 0 : index
    %86 = vector.load %arg5[%c0_28, %c0_29] : memref<1x128xf32, #tpu.memory_space<vmem>>, vector<1x128xf32>
    %87 = vector.broadcast %86 : vector<1x128xf32> to vector<2x128xf32>
    %88 = arith.addf %85, %87 : vector<2x128xf32>
    %89 = tpu.iota {dimensions = array<i32: 1>} : vector<2x128xi32>
    %c64_i32_30 = arith.constant 64 : i32
    %90 = vector.broadcast %c64_i32_30 : i32 to vector<2x128xi32>
    %91 = arith.cmpi sge, %89, %90 : vector<2x128xi32>
    %c96_i32_31 = arith.constant 96 : i32
    %92 = vector.broadcast %c96_i32_31 : i32 to vector<2x128xi32>
    %93 = arith.cmpi slt, %89, %92 : vector<2x128xi32>
    %94 = arith.andi %91, %93 : vector<2x128xi1>
    %95 = math.tanh %88 : vector<2x128xf32>
    %96 = arith.negf %88 : vector<2x128xf32>
    %97 = math.exp %96 : vector<2x128xf32>
    %cst_32 = arith.constant 1.000000e+00 : f32
    %98 = vector.broadcast %cst_32 : f32 to vector<2x128xf32>
    %99 = arith.addf %98, %97 : vector<2x128xf32>
    %100 = arith.divf %98, %99 : vector<2x128xf32>
    %101 = arith.select %94, %95, %100 : vector<2x128xi1>, vector<2x128xf32>
    %102 = vector.extract_strided_slice %101 {offsets = [0, 0], sizes = [2, 32], strides = [1, 1]} : vector<2x128xf32> to vector<2x32xf32>
    %103 = vector.extract_strided_slice %101 {offsets = [0, 32], sizes = [2, 32], strides = [1, 1]} : vector<2x128xf32> to vector<2x32xf32>
    %104 = vector.extract_strided_slice %101 {offsets = [0, 64], sizes = [2, 32], strides = [1, 1]} : vector<2x128xf32> to vector<2x32xf32>
    %105 = vector.extract_strided_slice %101 {offsets = [0, 96], sizes = [2, 32], strides = [1, 1]} : vector<2x128xf32> to vector<2x32xf32>
    %106 = arith.mulf %103, %42 : vector<2x32xf32>
    %107 = arith.mulf %102, %104 : vector<2x32xf32>
    %108 = arith.addf %106, %107 : vector<2x32xf32>
    %109 = math.tanh %108 : vector<2x32xf32>
    %110 = arith.mulf %105, %109 : vector<2x32xf32>
    %111 = vector.extract_strided_slice %10 {offsets = [0, 6, 128], sizes = [2, 1, 128], strides = [1, 1, 1]} : vector<2x8x256xf32> to vector<2x1x128xf32>
    %112 = vector.shape_cast %111 : vector<2x1x128xf32> to vector<2x128xf32>
    %113 = arith.truncf %75 : vector<2x32xf32> to vector<2x32xbf16>
    %c0_33 = arith.constant 0 : index
    %c0_34 = arith.constant 0 : index
    %114 = vector.load %arg4[%c0_33, %c0_34] : memref<32x128xbf16, #tpu.memory_space<vmem>>, vector<32x128xbf16>
    %cst_35 = arith.constant dense<0.000000e+00> : vector<2x128xf32>
    %115 = tpu.matmul %113, %114, %cst_35 {dimension_numbers = #tpu.dot_dimension_numbers<[1], [0], [0], [1], [0, 0, 1, 1], [], []>} : vector<2x32xbf16>, vector<32x128xbf16>, vector<2x128xf32> -> vector<2x128xf32>
    %116 = arith.addf %112, %115 : vector<2x128xf32>
    %c0_36 = arith.constant 0 : index
    %c0_37 = arith.constant 0 : index
    %117 = vector.load %arg6[%c0_36, %c0_37] : memref<1x128xf32, #tpu.memory_space<vmem>>, vector<1x128xf32>
    %118 = vector.broadcast %117 : vector<1x128xf32> to vector<2x128xf32>
    %119 = arith.addf %116, %118 : vector<2x128xf32>
    %120 = tpu.iota {dimensions = array<i32: 1>} : vector<2x128xi32>
    %c64_i32_38 = arith.constant 64 : i32
    %121 = vector.broadcast %c64_i32_38 : i32 to vector<2x128xi32>
    %122 = arith.cmpi sge, %120, %121 : vector<2x128xi32>
    %c96_i32_39 = arith.constant 96 : i32
    %123 = vector.broadcast %c96_i32_39 : i32 to vector<2x128xi32>
    %124 = arith.cmpi slt, %120, %123 : vector<2x128xi32>
    %125 = arith.andi %122, %124 : vector<2x128xi1>
    %126 = math.tanh %119 : vector<2x128xf32>
    %127 = arith.negf %119 : vector<2x128xf32>
    %128 = math.exp %127 : vector<2x128xf32>
    %cst_40 = arith.constant 1.000000e+00 : f32
    %129 = vector.broadcast %cst_40 : f32 to vector<2x128xf32>
    %130 = arith.addf %129, %128 : vector<2x128xf32>
    %131 = arith.divf %129, %130 : vector<2x128xf32>
    %132 = arith.select %125, %126, %131 : vector<2x128xi1>, vector<2x128xf32>
    %133 = vector.extract_strided_slice %132 {offsets = [0, 0], sizes = [2, 32], strides = [1, 1]} : vector<2x128xf32> to vector<2x32xf32>
    %134 = vector.extract_strided_slice %132 {offsets = [0, 32], sizes = [2, 32], strides = [1, 1]} : vector<2x128xf32> to vector<2x32xf32>
    %135 = vector.extract_strided_slice %132 {offsets = [0, 64], sizes = [2, 32], strides = [1, 1]} : vector<2x128xf32> to vector<2x32xf32>
    %136 = vector.extract_strided_slice %132 {offsets = [0, 96], sizes = [2, 32], strides = [1, 1]} : vector<2x128xf32> to vector<2x32xf32>
    %137 = arith.mulf %134, %73 : vector<2x32xf32>
    %138 = arith.mulf %133, %135 : vector<2x32xf32>
    %139 = arith.addf %137, %138 : vector<2x32xf32>
    %140 = math.tanh %139 : vector<2x32xf32>
    %141 = arith.mulf %136, %140 : vector<2x32xf32>
    %142 = math.tanh %110 : vector<2x32xf32>
    %143 = arith.maximumf %77, %142 : vector<2x32xf32>
    %144 = math.tanh %141 : vector<2x32xf32>
    %145 = arith.maximumf %79, %144 : vector<2x32xf32>
    %146 = vector.extract_strided_slice %10 {offsets = [0, 2, 0], sizes = [2, 1, 128], strides = [1, 1, 1]} : vector<2x8x256xf32> to vector<2x1x128xf32>
    %147 = vector.shape_cast %146 : vector<2x1x128xf32> to vector<2x128xf32>
    %148 = arith.truncf %110 : vector<2x32xf32> to vector<2x32xbf16>
    %c0_41 = arith.constant 0 : index
    %c0_42 = arith.constant 0 : index
    %149 = vector.load %arg3[%c0_41, %c0_42] : memref<32x128xbf16, #tpu.memory_space<vmem>>, vector<32x128xbf16>
    %cst_43 = arith.constant dense<0.000000e+00> : vector<2x128xf32>
    %150 = tpu.matmul %148, %149, %cst_43 {dimension_numbers = #tpu.dot_dimension_numbers<[1], [0], [0], [1], [0, 0, 1, 1], [], []>} : vector<2x32xbf16>, vector<32x128xbf16>, vector<2x128xf32> -> vector<2x128xf32>
    %151 = arith.addf %147, %150 : vector<2x128xf32>
    %c0_44 = arith.constant 0 : index
    %c0_45 = arith.constant 0 : index
    %152 = vector.load %arg5[%c0_44, %c0_45] : memref<1x128xf32, #tpu.memory_space<vmem>>, vector<1x128xf32>
    %153 = vector.broadcast %152 : vector<1x128xf32> to vector<2x128xf32>
    %154 = arith.addf %151, %153 : vector<2x128xf32>
    %155 = tpu.iota {dimensions = array<i32: 1>} : vector<2x128xi32>
    %c64_i32_46 = arith.constant 64 : i32
    %156 = vector.broadcast %c64_i32_46 : i32 to vector<2x128xi32>
    %157 = arith.cmpi sge, %155, %156 : vector<2x128xi32>
    %c96_i32_47 = arith.constant 96 : i32
    %158 = vector.broadcast %c96_i32_47 : i32 to vector<2x128xi32>
    %159 = arith.cmpi slt, %155, %158 : vector<2x128xi32>
    %160 = arith.andi %157, %159 : vector<2x128xi1>
    %161 = math.tanh %154 : vector<2x128xf32>
    %162 = arith.negf %154 : vector<2x128xf32>
    %163 = math.exp %162 : vector<2x128xf32>
    %cst_48 = arith.constant 1.000000e+00 : f32
    %164 = vector.broadcast %cst_48 : f32 to vector<2x128xf32>
    %165 = arith.addf %164, %163 : vector<2x128xf32>
    %166 = arith.divf %164, %165 : vector<2x128xf32>
    %167 = arith.select %160, %161, %166 : vector<2x128xi1>, vector<2x128xf32>
    %168 = vector.extract_strided_slice %167 {offsets = [0, 0], sizes = [2, 32], strides = [1, 1]} : vector<2x128xf32> to vector<2x32xf32>
    %169 = vector.extract_strided_slice %167 {offsets = [0, 32], sizes = [2, 32], strides = [1, 1]} : vector<2x128xf32> to vector<2x32xf32>
    %170 = vector.extract_strided_slice %167 {offsets = [0, 64], sizes = [2, 32], strides = [1, 1]} : vector<2x128xf32> to vector<2x32xf32>
    %171 = vector.extract_strided_slice %167 {offsets = [0, 96], sizes = [2, 32], strides = [1, 1]} : vector<2x128xf32> to vector<2x32xf32>
    %172 = arith.mulf %169, %108 : vector<2x32xf32>
    %173 = arith.mulf %168, %170 : vector<2x32xf32>
    %174 = arith.addf %172, %173 : vector<2x32xf32>
    %175 = math.tanh %174 : vector<2x32xf32>
    %176 = arith.mulf %171, %175 : vector<2x32xf32>
    %177 = vector.extract_strided_slice %10 {offsets = [0, 5, 128], sizes = [2, 1, 128], strides = [1, 1, 1]} : vector<2x8x256xf32> to vector<2x1x128xf32>
    %178 = vector.shape_cast %177 : vector<2x1x128xf32> to vector<2x128xf32>
    %179 = arith.truncf %141 : vector<2x32xf32> to vector<2x32xbf16>
    %c0_49 = arith.constant 0 : index
    %c0_50 = arith.constant 0 : index
    %180 = vector.load %arg4[%c0_49, %c0_50] : memref<32x128xbf16, #tpu.memory_space<vmem>>, vector<32x128xbf16>
    %cst_51 = arith.constant dense<0.000000e+00> : vector<2x128xf32>
    %181 = tpu.matmul %179, %180, %cst_51 {dimension_numbers = #tpu.dot_dimension_numbers<[1], [0], [0], [1], [0, 0, 1, 1], [], []>} : vector<2x32xbf16>, vector<32x128xbf16>, vector<2x128xf32> -> vector<2x128xf32>
    %182 = arith.addf %178, %181 : vector<2x128xf32>
    %c0_52 = arith.constant 0 : index
    %c0_53 = arith.constant 0 : index
    %183 = vector.load %arg6[%c0_52, %c0_53] : memref<1x128xf32, #tpu.memory_space<vmem>>, vector<1x128xf32>
    %184 = vector.broadcast %183 : vector<1x128xf32> to vector<2x128xf32>
    %185 = arith.addf %182, %184 : vector<2x128xf32>
    %186 = tpu.iota {dimensions = array<i32: 1>} : vector<2x128xi32>
    %c64_i32_54 = arith.constant 64 : i32
    %187 = vector.broadcast %c64_i32_54 : i32 to vector<2x128xi32>
    %188 = arith.cmpi sge, %186, %187 : vector<2x128xi32>
    %c96_i32_55 = arith.constant 96 : i32
    %189 = vector.broadcast %c96_i32_55 : i32 to vector<2x128xi32>
    %190 = arith.cmpi slt, %186, %189 : vector<2x128xi32>
    %191 = arith.andi %188, %190 : vector<2x128xi1>
    %192 = math.tanh %185 : vector<2x128xf32>
    %193 = arith.negf %185 : vector<2x128xf32>
    %194 = math.exp %193 : vector<2x128xf32>
    %cst_56 = arith.constant 1.000000e+00 : f32
    %195 = vector.broadcast %cst_56 : f32 to vector<2x128xf32>
    %196 = arith.addf %195, %194 : vector<2x128xf32>
    %197 = arith.divf %195, %196 : vector<2x128xf32>
    %198 = arith.select %191, %192, %197 : vector<2x128xi1>, vector<2x128xf32>
    %199 = vector.extract_strided_slice %198 {offsets = [0, 0], sizes = [2, 32], strides = [1, 1]} : vector<2x128xf32> to vector<2x32xf32>
    %200 = vector.extract_strided_slice %198 {offsets = [0, 32], sizes = [2, 32], strides = [1, 1]} : vector<2x128xf32> to vector<2x32xf32>
    %201 = vector.extract_strided_slice %198 {offsets = [0, 64], sizes = [2, 32], strides = [1, 1]} : vector<2x128xf32> to vector<2x32xf32>
    %202 = vector.extract_strided_slice %198 {offsets = [0, 96], sizes = [2, 32], strides = [1, 1]} : vector<2x128xf32> to vector<2x32xf32>
    %203 = arith.mulf %200, %139 : vector<2x32xf32>
    %204 = arith.mulf %199, %201 : vector<2x32xf32>
    %205 = arith.addf %203, %204 : vector<2x32xf32>
    %206 = math.tanh %205 : vector<2x32xf32>
    %207 = arith.mulf %202, %206 : vector<2x32xf32>
    %208 = math.tanh %176 : vector<2x32xf32>
    %209 = arith.maximumf %143, %208 : vector<2x32xf32>
    %210 = math.tanh %207 : vector<2x32xf32>
    %211 = arith.maximumf %145, %210 : vector<2x32xf32>
    %212 = vector.extract_strided_slice %10 {offsets = [0, 3, 0], sizes = [2, 1, 128], strides = [1, 1, 1]} : vector<2x8x256xf32> to vector<2x1x128xf32>
    %213 = vector.shape_cast %212 : vector<2x1x128xf32> to vector<2x128xf32>
    %214 = arith.truncf %176 : vector<2x32xf32> to vector<2x32xbf16>
    %c0_57 = arith.constant 0 : index
    %c0_58 = arith.constant 0 : index
    %215 = vector.load %arg3[%c0_57, %c0_58] : memref<32x128xbf16, #tpu.memory_space<vmem>>, vector<32x128xbf16>
    %cst_59 = arith.constant dense<0.000000e+00> : vector<2x128xf32>
    %216 = tpu.matmul %214, %215, %cst_59 {dimension_numbers = #tpu.dot_dimension_numbers<[1], [0], [0], [1], [0, 0, 1, 1], [], []>} : vector<2x32xbf16>, vector<32x128xbf16>, vector<2x128xf32> -> vector<2x128xf32>
    %217 = arith.addf %213, %216 : vector<2x128xf32>
    %c0_60 = arith.constant 0 : index
    %c0_61 = arith.constant 0 : index
    %218 = vector.load %arg5[%c0_60, %c0_61] : memref<1x128xf32, #tpu.memory_space<vmem>>, vector<1x128xf32>
    %219 = vector.broadcast %218 : vector<1x128xf32> to vector<2x128xf32>
    %220 = arith.addf %217, %219 : vector<2x128xf32>
    %221 = tpu.iota {dimensions = array<i32: 1>} : vector<2x128xi32>
    %c64_i32_62 = arith.constant 64 : i32
    %222 = vector.broadcast %c64_i32_62 : i32 to vector<2x128xi32>
    %223 = arith.cmpi sge, %221, %222 : vector<2x128xi32>
    %c96_i32_63 = arith.constant 96 : i32
    %224 = vector.broadcast %c96_i32_63 : i32 to vector<2x128xi32>
    %225 = arith.cmpi slt, %221, %224 : vector<2x128xi32>
    %226 = arith.andi %223, %225 : vector<2x128xi1>
    %227 = math.tanh %220 : vector<2x128xf32>
    %228 = arith.negf %220 : vector<2x128xf32>
    %229 = math.exp %228 : vector<2x128xf32>
    %cst_64 = arith.constant 1.000000e+00 : f32
    %230 = vector.broadcast %cst_64 : f32 to vector<2x128xf32>
    %231 = arith.addf %230, %229 : vector<2x128xf32>
    %232 = arith.divf %230, %231 : vector<2x128xf32>
    %233 = arith.select %226, %227, %232 : vector<2x128xi1>, vector<2x128xf32>
    %234 = vector.extract_strided_slice %233 {offsets = [0, 0], sizes = [2, 32], strides = [1, 1]} : vector<2x128xf32> to vector<2x32xf32>
    %235 = vector.extract_strided_slice %233 {offsets = [0, 32], sizes = [2, 32], strides = [1, 1]} : vector<2x128xf32> to vector<2x32xf32>
    %236 = vector.extract_strided_slice %233 {offsets = [0, 64], sizes = [2, 32], strides = [1, 1]} : vector<2x128xf32> to vector<2x32xf32>
    %237 = vector.extract_strided_slice %233 {offsets = [0, 96], sizes = [2, 32], strides = [1, 1]} : vector<2x128xf32> to vector<2x32xf32>
    %238 = arith.mulf %235, %174 : vector<2x32xf32>
    %239 = arith.mulf %234, %236 : vector<2x32xf32>
    %240 = arith.addf %238, %239 : vector<2x32xf32>
    %241 = math.tanh %240 : vector<2x32xf32>
    %242 = arith.mulf %237, %241 : vector<2x32xf32>
    %243 = vector.extract_strided_slice %10 {offsets = [0, 4, 128], sizes = [2, 1, 128], strides = [1, 1, 1]} : vector<2x8x256xf32> to vector<2x1x128xf32>
    %244 = vector.shape_cast %243 : vector<2x1x128xf32> to vector<2x128xf32>
    %245 = arith.truncf %207 : vector<2x32xf32> to vector<2x32xbf16>
    %c0_65 = arith.constant 0 : index
    %c0_66 = arith.constant 0 : index
    %246 = vector.load %arg4[%c0_65, %c0_66] : memref<32x128xbf16, #tpu.memory_space<vmem>>, vector<32x128xbf16>
    %cst_67 = arith.constant dense<0.000000e+00> : vector<2x128xf32>
    %247 = tpu.matmul %245, %246, %cst_67 {dimension_numbers = #tpu.dot_dimension_numbers<[1], [0], [0], [1], [0, 0, 1, 1], [], []>} : vector<2x32xbf16>, vector<32x128xbf16>, vector<2x128xf32> -> vector<2x128xf32>
    %248 = arith.addf %244, %247 : vector<2x128xf32>
    %c0_68 = arith.constant 0 : index
    %c0_69 = arith.constant 0 : index
    %249 = vector.load %arg6[%c0_68, %c0_69] : memref<1x128xf32, #tpu.memory_space<vmem>>, vector<1x128xf32>
    %250 = vector.broadcast %249 : vector<1x128xf32> to vector<2x128xf32>
    %251 = arith.addf %248, %250 : vector<2x128xf32>
    %252 = tpu.iota {dimensions = array<i32: 1>} : vector<2x128xi32>
    %c64_i32_70 = arith.constant 64 : i32
    %253 = vector.broadcast %c64_i32_70 : i32 to vector<2x128xi32>
    %254 = arith.cmpi sge, %252, %253 : vector<2x128xi32>
    %c96_i32_71 = arith.constant 96 : i32
    %255 = vector.broadcast %c96_i32_71 : i32 to vector<2x128xi32>
    %256 = arith.cmpi slt, %252, %255 : vector<2x128xi32>
    %257 = arith.andi %254, %256 : vector<2x128xi1>
    %258 = math.tanh %251 : vector<2x128xf32>
    %259 = arith.negf %251 : vector<2x128xf32>
    %260 = math.exp %259 : vector<2x128xf32>
    %cst_72 = arith.constant 1.000000e+00 : f32
    %261 = vector.broadcast %cst_72 : f32 to vector<2x128xf32>
    %262 = arith.addf %261, %260 : vector<2x128xf32>
    %263 = arith.divf %261, %262 : vector<2x128xf32>
    %264 = arith.select %257, %258, %263 : vector<2x128xi1>, vector<2x128xf32>
    %265 = vector.extract_strided_slice %264 {offsets = [0, 0], sizes = [2, 32], strides = [1, 1]} : vector<2x128xf32> to vector<2x32xf32>
    %266 = vector.extract_strided_slice %264 {offsets = [0, 32], sizes = [2, 32], strides = [1, 1]} : vector<2x128xf32> to vector<2x32xf32>
    %267 = vector.extract_strided_slice %264 {offsets = [0, 64], sizes = [2, 32], strides = [1, 1]} : vector<2x128xf32> to vector<2x32xf32>
    %268 = vector.extract_strided_slice %264 {offsets = [0, 96], sizes = [2, 32], strides = [1, 1]} : vector<2x128xf32> to vector<2x32xf32>
    %269 = arith.mulf %266, %205 : vector<2x32xf32>
    %270 = arith.mulf %265, %267 : vector<2x32xf32>
    %271 = arith.addf %269, %270 : vector<2x32xf32>
    %272 = math.tanh %271 : vector<2x32xf32>
    %273 = arith.mulf %268, %272 : vector<2x32xf32>
    %274 = math.tanh %242 : vector<2x32xf32>
    %275 = arith.maximumf %209, %274 : vector<2x32xf32>
    %276 = math.tanh %273 : vector<2x32xf32>
    %277 = arith.maximumf %211, %276 : vector<2x32xf32>
    %278 = vector.extract_strided_slice %10 {offsets = [0, 4, 0], sizes = [2, 1, 128], strides = [1, 1, 1]} : vector<2x8x256xf32> to vector<2x1x128xf32>
    %279 = vector.shape_cast %278 : vector<2x1x128xf32> to vector<2x128xf32>
    %280 = arith.truncf %242 : vector<2x32xf32> to vector<2x32xbf16>
    %c0_73 = arith.constant 0 : index
    %c0_74 = arith.constant 0 : index
    %281 = vector.load %arg3[%c0_73, %c0_74] : memref<32x128xbf16, #tpu.memory_space<vmem>>, vector<32x128xbf16>
    %cst_75 = arith.constant dense<0.000000e+00> : vector<2x128xf32>
    %282 = tpu.matmul %280, %281, %cst_75 {dimension_numbers = #tpu.dot_dimension_numbers<[1], [0], [0], [1], [0, 0, 1, 1], [], []>} : vector<2x32xbf16>, vector<32x128xbf16>, vector<2x128xf32> -> vector<2x128xf32>
    %283 = arith.addf %279, %282 : vector<2x128xf32>
    %c0_76 = arith.constant 0 : index
    %c0_77 = arith.constant 0 : index
    %284 = vector.load %arg5[%c0_76, %c0_77] : memref<1x128xf32, #tpu.memory_space<vmem>>, vector<1x128xf32>
    %285 = vector.broadcast %284 : vector<1x128xf32> to vector<2x128xf32>
    %286 = arith.addf %283, %285 : vector<2x128xf32>
    %287 = tpu.iota {dimensions = array<i32: 1>} : vector<2x128xi32>
    %c64_i32_78 = arith.constant 64 : i32
    %288 = vector.broadcast %c64_i32_78 : i32 to vector<2x128xi32>
    %289 = arith.cmpi sge, %287, %288 : vector<2x128xi32>
    %c96_i32_79 = arith.constant 96 : i32
    %290 = vector.broadcast %c96_i32_79 : i32 to vector<2x128xi32>
    %291 = arith.cmpi slt, %287, %290 : vector<2x128xi32>
    %292 = arith.andi %289, %291 : vector<2x128xi1>
    %293 = math.tanh %286 : vector<2x128xf32>
    %294 = arith.negf %286 : vector<2x128xf32>
    %295 = math.exp %294 : vector<2x128xf32>
    %cst_80 = arith.constant 1.000000e+00 : f32
    %296 = vector.broadcast %cst_80 : f32 to vector<2x128xf32>
    %297 = arith.addf %296, %295 : vector<2x128xf32>
    %298 = arith.divf %296, %297 : vector<2x128xf32>
    %299 = arith.select %292, %293, %298 : vector<2x128xi1>, vector<2x128xf32>
    %300 = vector.extract_strided_slice %299 {offsets = [0, 0], sizes = [2, 32], strides = [1, 1]} : vector<2x128xf32> to vector<2x32xf32>
    %301 = vector.extract_strided_slice %299 {offsets = [0, 32], sizes = [2, 32], strides = [1, 1]} : vector<2x128xf32> to vector<2x32xf32>
    %302 = vector.extract_strided_slice %299 {offsets = [0, 64], sizes = [2, 32], strides = [1, 1]} : vector<2x128xf32> to vector<2x32xf32>
    %303 = vector.extract_strided_slice %299 {offsets = [0, 96], sizes = [2, 32], strides = [1, 1]} : vector<2x128xf32> to vector<2x32xf32>
    %304 = arith.mulf %301, %240 : vector<2x32xf32>
    %305 = arith.mulf %300, %302 : vector<2x32xf32>
    %306 = arith.addf %304, %305 : vector<2x32xf32>
    %307 = math.tanh %306 : vector<2x32xf32>
    %308 = arith.mulf %303, %307 : vector<2x32xf32>
    %309 = vector.extract_strided_slice %10 {offsets = [0, 3, 128], sizes = [2, 1, 128], strides = [1, 1, 1]} : vector<2x8x256xf32> to vector<2x1x128xf32>
    %310 = vector.shape_cast %309 : vector<2x1x128xf32> to vector<2x128xf32>
    %311 = arith.truncf %273 : vector<2x32xf32> to vector<2x32xbf16>
    %c0_81 = arith.constant 0 : index
    %c0_82 = arith.constant 0 : index
    %312 = vector.load %arg4[%c0_81, %c0_82] : memref<32x128xbf16, #tpu.memory_space<vmem>>, vector<32x128xbf16>
    %cst_83 = arith.constant dense<0.000000e+00> : vector<2x128xf32>
    %313 = tpu.matmul %311, %312, %cst_83 {dimension_numbers = #tpu.dot_dimension_numbers<[1], [0], [0], [1], [0, 0, 1, 1], [], []>} : vector<2x32xbf16>, vector<32x128xbf16>, vector<2x128xf32> -> vector<2x128xf32>
    %314 = arith.addf %310, %313 : vector<2x128xf32>
    %c0_84 = arith.constant 0 : index
    %c0_85 = arith.constant 0 : index
    %315 = vector.load %arg6[%c0_84, %c0_85] : memref<1x128xf32, #tpu.memory_space<vmem>>, vector<1x128xf32>
    %316 = vector.broadcast %315 : vector<1x128xf32> to vector<2x128xf32>
    %317 = arith.addf %314, %316 : vector<2x128xf32>
    %318 = tpu.iota {dimensions = array<i32: 1>} : vector<2x128xi32>
    %c64_i32_86 = arith.constant 64 : i32
    %319 = vector.broadcast %c64_i32_86 : i32 to vector<2x128xi32>
    %320 = arith.cmpi sge, %318, %319 : vector<2x128xi32>
    %c96_i32_87 = arith.constant 96 : i32
    %321 = vector.broadcast %c96_i32_87 : i32 to vector<2x128xi32>
    %322 = arith.cmpi slt, %318, %321 : vector<2x128xi32>
    %323 = arith.andi %320, %322 : vector<2x128xi1>
    %324 = math.tanh %317 : vector<2x128xf32>
    %325 = arith.negf %317 : vector<2x128xf32>
    %326 = math.exp %325 : vector<2x128xf32>
    %cst_88 = arith.constant 1.000000e+00 : f32
    %327 = vector.broadcast %cst_88 : f32 to vector<2x128xf32>
    %328 = arith.addf %327, %326 : vector<2x128xf32>
    %329 = arith.divf %327, %328 : vector<2x128xf32>
    %330 = arith.select %323, %324, %329 : vector<2x128xi1>, vector<2x128xf32>
    %331 = vector.extract_strided_slice %330 {offsets = [0, 0], sizes = [2, 32], strides = [1, 1]} : vector<2x128xf32> to vector<2x32xf32>
    %332 = vector.extract_strided_slice %330 {offsets = [0, 32], sizes = [2, 32], strides = [1, 1]} : vector<2x128xf32> to vector<2x32xf32>
    %333 = vector.extract_strided_slice %330 {offsets = [0, 64], sizes = [2, 32], strides = [1, 1]} : vector<2x128xf32> to vector<2x32xf32>
    %334 = vector.extract_strided_slice %330 {offsets = [0, 96], sizes = [2, 32], strides = [1, 1]} : vector<2x128xf32> to vector<2x32xf32>
    %335 = arith.mulf %332, %271 : vector<2x32xf32>
    %336 = arith.mulf %331, %333 : vector<2x32xf32>
    %337 = arith.addf %335, %336 : vector<2x32xf32>
    %338 = math.tanh %337 : vector<2x32xf32>
    %339 = arith.mulf %334, %338 : vector<2x32xf32>
    %340 = math.tanh %308 : vector<2x32xf32>
    %341 = arith.maximumf %275, %340 : vector<2x32xf32>
    %342 = math.tanh %339 : vector<2x32xf32>
    %343 = arith.maximumf %277, %342 : vector<2x32xf32>
    %344 = vector.extract_strided_slice %10 {offsets = [0, 5, 0], sizes = [2, 1, 128], strides = [1, 1, 1]} : vector<2x8x256xf32> to vector<2x1x128xf32>
    %345 = vector.shape_cast %344 : vector<2x1x128xf32> to vector<2x128xf32>
    %346 = arith.truncf %308 : vector<2x32xf32> to vector<2x32xbf16>
    %c0_89 = arith.constant 0 : index
    %c0_90 = arith.constant 0 : index
    %347 = vector.load %arg3[%c0_89, %c0_90] : memref<32x128xbf16, #tpu.memory_space<vmem>>, vector<32x128xbf16>
    %cst_91 = arith.constant dense<0.000000e+00> : vector<2x128xf32>
    %348 = tpu.matmul %346, %347, %cst_91 {dimension_numbers = #tpu.dot_dimension_numbers<[1], [0], [0], [1], [0, 0, 1, 1], [], []>} : vector<2x32xbf16>, vector<32x128xbf16>, vector<2x128xf32> -> vector<2x128xf32>
    %349 = arith.addf %345, %348 : vector<2x128xf32>
    %c0_92 = arith.constant 0 : index
    %c0_93 = arith.constant 0 : index
    %350 = vector.load %arg5[%c0_92, %c0_93] : memref<1x128xf32, #tpu.memory_space<vmem>>, vector<1x128xf32>
    %351 = vector.broadcast %350 : vector<1x128xf32> to vector<2x128xf32>
    %352 = arith.addf %349, %351 : vector<2x128xf32>
    %353 = tpu.iota {dimensions = array<i32: 1>} : vector<2x128xi32>
    %c64_i32_94 = arith.constant 64 : i32
    %354 = vector.broadcast %c64_i32_94 : i32 to vector<2x128xi32>
    %355 = arith.cmpi sge, %353, %354 : vector<2x128xi32>
    %c96_i32_95 = arith.constant 96 : i32
    %356 = vector.broadcast %c96_i32_95 : i32 to vector<2x128xi32>
    %357 = arith.cmpi slt, %353, %356 : vector<2x128xi32>
    %358 = arith.andi %355, %357 : vector<2x128xi1>
    %359 = math.tanh %352 : vector<2x128xf32>
    %360 = arith.negf %352 : vector<2x128xf32>
    %361 = math.exp %360 : vector<2x128xf32>
    %cst_96 = arith.constant 1.000000e+00 : f32
    %362 = vector.broadcast %cst_96 : f32 to vector<2x128xf32>
    %363 = arith.addf %362, %361 : vector<2x128xf32>
    %364 = arith.divf %362, %363 : vector<2x128xf32>
    %365 = arith.select %358, %359, %364 : vector<2x128xi1>, vector<2x128xf32>
    %366 = vector.extract_strided_slice %365 {offsets = [0, 0], sizes = [2, 32], strides = [1, 1]} : vector<2x128xf32> to vector<2x32xf32>
    %367 = vector.extract_strided_slice %365 {offsets = [0, 32], sizes = [2, 32], strides = [1, 1]} : vector<2x128xf32> to vector<2x32xf32>
    %368 = vector.extract_strided_slice %365 {offsets = [0, 64], sizes = [2, 32], strides = [1, 1]} : vector<2x128xf32> to vector<2x32xf32>
    %369 = vector.extract_strided_slice %365 {offsets = [0, 96], sizes = [2, 32], strides = [1, 1]} : vector<2x128xf32> to vector<2x32xf32>
    %370 = arith.mulf %367, %306 : vector<2x32xf32>
    %371 = arith.mulf %366, %368 : vector<2x32xf32>
    %372 = arith.addf %370, %371 : vector<2x32xf32>
    %373 = math.tanh %372 : vector<2x32xf32>
    %374 = arith.mulf %369, %373 : vector<2x32xf32>
    %375 = vector.extract_strided_slice %10 {offsets = [0, 2, 128], sizes = [2, 1, 128], strides = [1, 1, 1]} : vector<2x8x256xf32> to vector<2x1x128xf32>
    %376 = vector.shape_cast %375 : vector<2x1x128xf32> to vector<2x128xf32>
    %377 = arith.truncf %339 : vector<2x32xf32> to vector<2x32xbf16>
    %c0_97 = arith.constant 0 : index
    %c0_98 = arith.constant 0 : index
    %378 = vector.load %arg4[%c0_97, %c0_98] : memref<32x128xbf16, #tpu.memory_space<vmem>>, vector<32x128xbf16>
    %cst_99 = arith.constant dense<0.000000e+00> : vector<2x128xf32>
    %379 = tpu.matmul %377, %378, %cst_99 {dimension_numbers = #tpu.dot_dimension_numbers<[1], [0], [0], [1], [0, 0, 1, 1], [], []>} : vector<2x32xbf16>, vector<32x128xbf16>, vector<2x128xf32> -> vector<2x128xf32>
    %380 = arith.addf %376, %379 : vector<2x128xf32>
    %c0_100 = arith.constant 0 : index
    %c0_101 = arith.constant 0 : index
    %381 = vector.load %arg6[%c0_100, %c0_101] : memref<1x128xf32, #tpu.memory_space<vmem>>, vector<1x128xf32>
    %382 = vector.broadcast %381 : vector<1x128xf32> to vector<2x128xf32>
    %383 = arith.addf %380, %382 : vector<2x128xf32>
    %384 = tpu.iota {dimensions = array<i32: 1>} : vector<2x128xi32>
    %c64_i32_102 = arith.constant 64 : i32
    %385 = vector.broadcast %c64_i32_102 : i32 to vector<2x128xi32>
    %386 = arith.cmpi sge, %384, %385 : vector<2x128xi32>
    %c96_i32_103 = arith.constant 96 : i32
    %387 = vector.broadcast %c96_i32_103 : i32 to vector<2x128xi32>
    %388 = arith.cmpi slt, %384, %387 : vector<2x128xi32>
    %389 = arith.andi %386, %388 : vector<2x128xi1>
    %390 = math.tanh %383 : vector<2x128xf32>
    %391 = arith.negf %383 : vector<2x128xf32>
    %392 = math.exp %391 : vector<2x128xf32>
    %cst_104 = arith.constant 1.000000e+00 : f32
    %393 = vector.broadcast %cst_104 : f32 to vector<2x128xf32>
    %394 = arith.addf %393, %392 : vector<2x128xf32>
    %395 = arith.divf %393, %394 : vector<2x128xf32>
    %396 = arith.select %389, %390, %395 : vector<2x128xi1>, vector<2x128xf32>
    %397 = vector.extract_strided_slice %396 {offsets = [0, 0], sizes = [2, 32], strides = [1, 1]} : vector<2x128xf32> to vector<2x32xf32>
    %398 = vector.extract_strided_slice %396 {offsets = [0, 32], sizes = [2, 32], strides = [1, 1]} : vector<2x128xf32> to vector<2x32xf32>
    %399 = vector.extract_strided_slice %396 {offsets = [0, 64], sizes = [2, 32], strides = [1, 1]} : vector<2x128xf32> to vector<2x32xf32>
    %400 = vector.extract_strided_slice %396 {offsets = [0, 96], sizes = [2, 32], strides = [1, 1]} : vector<2x128xf32> to vector<2x32xf32>
    %401 = arith.mulf %398, %337 : vector<2x32xf32>
    %402 = arith.mulf %397, %399 : vector<2x32xf32>
    %403 = arith.addf %401, %402 : vector<2x32xf32>
    %404 = math.tanh %403 : vector<2x32xf32>
    %405 = arith.mulf %400, %404 : vector<2x32xf32>
    %406 = math.tanh %374 : vector<2x32xf32>
    %407 = arith.maximumf %341, %406 : vector<2x32xf32>
    %408 = math.tanh %405 : vector<2x32xf32>
    %409 = arith.maximumf %343, %408 : vector<2x32xf32>
    %410 = vector.extract_strided_slice %10 {offsets = [0, 6, 0], sizes = [2, 1, 128], strides = [1, 1, 1]} : vector<2x8x256xf32> to vector<2x1x128xf32>
    %411 = vector.shape_cast %410 : vector<2x1x128xf32> to vector<2x128xf32>
    %412 = arith.truncf %374 : vector<2x32xf32> to vector<2x32xbf16>
    %c0_105 = arith.constant 0 : index
    %c0_106 = arith.constant 0 : index
    %413 = vector.load %arg3[%c0_105, %c0_106] : memref<32x128xbf16, #tpu.memory_space<vmem>>, vector<32x128xbf16>
    %cst_107 = arith.constant dense<0.000000e+00> : vector<2x128xf32>
    %414 = tpu.matmul %412, %413, %cst_107 {dimension_numbers = #tpu.dot_dimension_numbers<[1], [0], [0], [1], [0, 0, 1, 1], [], []>} : vector<2x32xbf16>, vector<32x128xbf16>, vector<2x128xf32> -> vector<2x128xf32>
    %415 = arith.addf %411, %414 : vector<2x128xf32>
    %c0_108 = arith.constant 0 : index
    %c0_109 = arith.constant 0 : index
    %416 = vector.load %arg5[%c0_108, %c0_109] : memref<1x128xf32, #tpu.memory_space<vmem>>, vector<1x128xf32>
    %417 = vector.broadcast %416 : vector<1x128xf32> to vector<2x128xf32>
    %418 = arith.addf %415, %417 : vector<2x128xf32>
    %419 = tpu.iota {dimensions = array<i32: 1>} : vector<2x128xi32>
    %c64_i32_110 = arith.constant 64 : i32
    %420 = vector.broadcast %c64_i32_110 : i32 to vector<2x128xi32>
    %421 = arith.cmpi sge, %419, %420 : vector<2x128xi32>
    %c96_i32_111 = arith.constant 96 : i32
    %422 = vector.broadcast %c96_i32_111 : i32 to vector<2x128xi32>
    %423 = arith.cmpi slt, %419, %422 : vector<2x128xi32>
    %424 = arith.andi %421, %423 : vector<2x128xi1>
    %425 = math.tanh %418 : vector<2x128xf32>
    %426 = arith.negf %418 : vector<2x128xf32>
    %427 = math.exp %426 : vector<2x128xf32>
    %cst_112 = arith.constant 1.000000e+00 : f32
    %428 = vector.broadcast %cst_112 : f32 to vector<2x128xf32>
    %429 = arith.addf %428, %427 : vector<2x128xf32>
    %430 = arith.divf %428, %429 : vector<2x128xf32>
    %431 = arith.select %424, %425, %430 : vector<2x128xi1>, vector<2x128xf32>
    %432 = vector.extract_strided_slice %431 {offsets = [0, 0], sizes = [2, 32], strides = [1, 1]} : vector<2x128xf32> to vector<2x32xf32>
    %433 = vector.extract_strided_slice %431 {offsets = [0, 32], sizes = [2, 32], strides = [1, 1]} : vector<2x128xf32> to vector<2x32xf32>
    %434 = vector.extract_strided_slice %431 {offsets = [0, 64], sizes = [2, 32], strides = [1, 1]} : vector<2x128xf32> to vector<2x32xf32>
    %435 = vector.extract_strided_slice %431 {offsets = [0, 96], sizes = [2, 32], strides = [1, 1]} : vector<2x128xf32> to vector<2x32xf32>
    %436 = arith.mulf %433, %372 : vector<2x32xf32>
    %437 = arith.mulf %432, %434 : vector<2x32xf32>
    %438 = arith.addf %436, %437 : vector<2x32xf32>
    %439 = math.tanh %438 : vector<2x32xf32>
    %440 = arith.mulf %435, %439 : vector<2x32xf32>
    %441 = vector.extract_strided_slice %10 {offsets = [0, 1, 128], sizes = [2, 1, 128], strides = [1, 1, 1]} : vector<2x8x256xf32> to vector<2x1x128xf32>
    %442 = vector.shape_cast %441 : vector<2x1x128xf32> to vector<2x128xf32>
    %443 = arith.truncf %405 : vector<2x32xf32> to vector<2x32xbf16>
    %c0_113 = arith.constant 0 : index
    %c0_114 = arith.constant 0 : index
    %444 = vector.load %arg4[%c0_113, %c0_114] : memref<32x128xbf16, #tpu.memory_space<vmem>>, vector<32x128xbf16>
    %cst_115 = arith.constant dense<0.000000e+00> : vector<2x128xf32>
    %445 = tpu.matmul %443, %444, %cst_115 {dimension_numbers = #tpu.dot_dimension_numbers<[1], [0], [0], [1], [0, 0, 1, 1], [], []>} : vector<2x32xbf16>, vector<32x128xbf16>, vector<2x128xf32> -> vector<2x128xf32>
    %446 = arith.addf %442, %445 : vector<2x128xf32>
    %c0_116 = arith.constant 0 : index
    %c0_117 = arith.constant 0 : index
    %447 = vector.load %arg6[%c0_116, %c0_117] : memref<1x128xf32, #tpu.memory_space<vmem>>, vector<1x128xf32>
    %448 = vector.broadcast %447 : vector<1x128xf32> to vector<2x128xf32>
    %449 = arith.addf %446, %448 : vector<2x128xf32>
    %450 = tpu.iota {dimensions = array<i32: 1>} : vector<2x128xi32>
    %c64_i32_118 = arith.constant 64 : i32
    %451 = vector.broadcast %c64_i32_118 : i32 to vector<2x128xi32>
    %452 = arith.cmpi sge, %450, %451 : vector<2x128xi32>
    %c96_i32_119 = arith.constant 96 : i32
    %453 = vector.broadcast %c96_i32_119 : i32 to vector<2x128xi32>
    %454 = arith.cmpi slt, %450, %453 : vector<2x128xi32>
    %455 = arith.andi %452, %454 : vector<2x128xi1>
    %456 = math.tanh %449 : vector<2x128xf32>
    %457 = arith.negf %449 : vector<2x128xf32>
    %458 = math.exp %457 : vector<2x128xf32>
    %cst_120 = arith.constant 1.000000e+00 : f32
    %459 = vector.broadcast %cst_120 : f32 to vector<2x128xf32>
    %460 = arith.addf %459, %458 : vector<2x128xf32>
    %461 = arith.divf %459, %460 : vector<2x128xf32>
    %462 = arith.select %455, %456, %461 : vector<2x128xi1>, vector<2x128xf32>
    %463 = vector.extract_strided_slice %462 {offsets = [0, 0], sizes = [2, 32], strides = [1, 1]} : vector<2x128xf32> to vector<2x32xf32>
    %464 = vector.extract_strided_slice %462 {offsets = [0, 32], sizes = [2, 32], strides = [1, 1]} : vector<2x128xf32> to vector<2x32xf32>
    %465 = vector.extract_strided_slice %462 {offsets = [0, 64], sizes = [2, 32], strides = [1, 1]} : vector<2x128xf32> to vector<2x32xf32>
    %466 = vector.extract_strided_slice %462 {offsets = [0, 96], sizes = [2, 32], strides = [1, 1]} : vector<2x128xf32> to vector<2x32xf32>
    %467 = arith.mulf %464, %403 : vector<2x32xf32>
    %468 = arith.mulf %463, %465 : vector<2x32xf32>
    %469 = arith.addf %467, %468 : vector<2x32xf32>
    %470 = math.tanh %469 : vector<2x32xf32>
    %471 = arith.mulf %466, %470 : vector<2x32xf32>
    %472 = math.tanh %440 : vector<2x32xf32>
    %473 = arith.maximumf %407, %472 : vector<2x32xf32>
    %474 = math.tanh %471 : vector<2x32xf32>
    %475 = arith.maximumf %409, %474 : vector<2x32xf32>
    %476 = vector.extract_strided_slice %10 {offsets = [0, 7, 0], sizes = [2, 1, 128], strides = [1, 1, 1]} : vector<2x8x256xf32> to vector<2x1x128xf32>
    %477 = vector.shape_cast %476 : vector<2x1x128xf32> to vector<2x128xf32>
    %478 = arith.truncf %440 : vector<2x32xf32> to vector<2x32xbf16>
    %c0_121 = arith.constant 0 : index
    %c0_122 = arith.constant 0 : index
    %479 = vector.load %arg3[%c0_121, %c0_122] : memref<32x128xbf16, #tpu.memory_space<vmem>>, vector<32x128xbf16>
    %cst_123 = arith.constant dense<0.000000e+00> : vector<2x128xf32>
    %480 = tpu.matmul %478, %479, %cst_123 {dimension_numbers = #tpu.dot_dimension_numbers<[1], [0], [0], [1], [0, 0, 1, 1], [], []>} : vector<2x32xbf16>, vector<32x128xbf16>, vector<2x128xf32> -> vector<2x128xf32>
    %481 = arith.addf %477, %480 : vector<2x128xf32>
    %c0_124 = arith.constant 0 : index
    %c0_125 = arith.constant 0 : index
    %482 = vector.load %arg5[%c0_124, %c0_125] : memref<1x128xf32, #tpu.memory_space<vmem>>, vector<1x128xf32>
    %483 = vector.broadcast %482 : vector<1x128xf32> to vector<2x128xf32>
    %484 = arith.addf %481, %483 : vector<2x128xf32>
    %485 = tpu.iota {dimensions = array<i32: 1>} : vector<2x128xi32>
    %c64_i32_126 = arith.constant 64 : i32
    %486 = vector.broadcast %c64_i32_126 : i32 to vector<2x128xi32>
    %487 = arith.cmpi sge, %485, %486 : vector<2x128xi32>
    %c96_i32_127 = arith.constant 96 : i32
    %488 = vector.broadcast %c96_i32_127 : i32 to vector<2x128xi32>
    %489 = arith.cmpi slt, %485, %488 : vector<2x128xi32>
    %490 = arith.andi %487, %489 : vector<2x128xi1>
    %491 = math.tanh %484 : vector<2x128xf32>
    %492 = arith.negf %484 : vector<2x128xf32>
    %493 = math.exp %492 : vector<2x128xf32>
    %cst_128 = arith.constant 1.000000e+00 : f32
    %494 = vector.broadcast %cst_128 : f32 to vector<2x128xf32>
    %495 = arith.addf %494, %493 : vector<2x128xf32>
    %496 = arith.divf %494, %495 : vector<2x128xf32>
    %497 = arith.select %490, %491, %496 : vector<2x128xi1>, vector<2x128xf32>
    %498 = vector.extract_strided_slice %497 {offsets = [0, 0], sizes = [2, 32], strides = [1, 1]} : vector<2x128xf32> to vector<2x32xf32>
    %499 = vector.extract_strided_slice %497 {offsets = [0, 32], sizes = [2, 32], strides = [1, 1]} : vector<2x128xf32> to vector<2x32xf32>
    %500 = vector.extract_strided_slice %497 {offsets = [0, 64], sizes = [2, 32], strides = [1, 1]} : vector<2x128xf32> to vector<2x32xf32>
    %501 = vector.extract_strided_slice %497 {offsets = [0, 96], sizes = [2, 32], strides = [1, 1]} : vector<2x128xf32> to vector<2x32xf32>
    %502 = arith.mulf %499, %438 : vector<2x32xf32>
    %503 = arith.mulf %498, %500 : vector<2x32xf32>
    %504 = arith.addf %502, %503 : vector<2x32xf32>
    %505 = math.tanh %504 : vector<2x32xf32>
    %506 = arith.mulf %501, %505 : vector<2x32xf32>
    %507 = vector.extract_strided_slice %10 {offsets = [0, 0, 128], sizes = [2, 1, 128], strides = [1, 1, 1]} : vector<2x8x256xf32> to vector<2x1x128xf32>
    %508 = vector.shape_cast %507 : vector<2x1x128xf32> to vector<2x128xf32>
    %509 = arith.truncf %471 : vector<2x32xf32> to vector<2x32xbf16>
    %c0_129 = arith.constant 0 : index
    %c0_130 = arith.constant 0 : index
    %510 = vector.load %arg4[%c0_129, %c0_130] : memref<32x128xbf16, #tpu.memory_space<vmem>>, vector<32x128xbf16>
    %cst_131 = arith.constant dense<0.000000e+00> : vector<2x128xf32>
    %511 = tpu.matmul %509, %510, %cst_131 {dimension_numbers = #tpu.dot_dimension_numbers<[1], [0], [0], [1], [0, 0, 1, 1], [], []>} : vector<2x32xbf16>, vector<32x128xbf16>, vector<2x128xf32> -> vector<2x128xf32>
    %512 = arith.addf %508, %511 : vector<2x128xf32>
    %c0_132 = arith.constant 0 : index
    %c0_133 = arith.constant 0 : index
    %513 = vector.load %arg6[%c0_132, %c0_133] : memref<1x128xf32, #tpu.memory_space<vmem>>, vector<1x128xf32>
    %514 = vector.broadcast %513 : vector<1x128xf32> to vector<2x128xf32>
    %515 = arith.addf %512, %514 : vector<2x128xf32>
    %516 = tpu.iota {dimensions = array<i32: 1>} : vector<2x128xi32>
    %c64_i32_134 = arith.constant 64 : i32
    %517 = vector.broadcast %c64_i32_134 : i32 to vector<2x128xi32>
    %518 = arith.cmpi sge, %516, %517 : vector<2x128xi32>
    %c96_i32_135 = arith.constant 96 : i32
    %519 = vector.broadcast %c96_i32_135 : i32 to vector<2x128xi32>
    %520 = arith.cmpi slt, %516, %519 : vector<2x128xi32>
    %521 = arith.andi %518, %520 : vector<2x128xi1>
    %522 = math.tanh %515 : vector<2x128xf32>
    %523 = arith.negf %515 : vector<2x128xf32>
    %524 = math.exp %523 : vector<2x128xf32>
    %cst_136 = arith.constant 1.000000e+00 : f32
    %525 = vector.broadcast %cst_136 : f32 to vector<2x128xf32>
    %526 = arith.addf %525, %524 : vector<2x128xf32>
    %527 = arith.divf %525, %526 : vector<2x128xf32>
    %528 = arith.select %521, %522, %527 : vector<2x128xi1>, vector<2x128xf32>
    %529 = vector.extract_strided_slice %528 {offsets = [0, 0], sizes = [2, 32], strides = [1, 1]} : vector<2x128xf32> to vector<2x32xf32>
    %530 = vector.extract_strided_slice %528 {offsets = [0, 32], sizes = [2, 32], strides = [1, 1]} : vector<2x128xf32> to vector<2x32xf32>
    %531 = vector.extract_strided_slice %528 {offsets = [0, 64], sizes = [2, 32], strides = [1, 1]} : vector<2x128xf32> to vector<2x32xf32>
    %532 = vector.extract_strided_slice %528 {offsets = [0, 96], sizes = [2, 32], strides = [1, 1]} : vector<2x128xf32> to vector<2x32xf32>
    %533 = arith.mulf %530, %469 : vector<2x32xf32>
    %534 = arith.mulf %529, %531 : vector<2x32xf32>
    %535 = arith.addf %533, %534 : vector<2x32xf32>
    %536 = math.tanh %535 : vector<2x32xf32>
    %537 = arith.mulf %532, %536 : vector<2x32xf32>
    %538 = math.tanh %506 : vector<2x32xf32>
    %539 = arith.maximumf %473, %538 : vector<2x32xf32>
    %540 = math.tanh %537 : vector<2x32xf32>
    %541 = arith.maximumf %475, %540 : vector<2x32xf32>
    %542 = tpu.concatenate %539, %541, %5 in 1 : vector<2x32xf32>, vector<2x32xf32>, vector<2x16xf32> -> vector<2x80xf32>
    %543 = arith.truncf %542 : vector<2x80xf32> to vector<2x80xbf16>
    %c0_137 = arith.constant 0 : index
    %c0_138 = arith.constant 0 : index
    %544 = vector.load %arg7[%c0_137, %c0_138] : memref<80x32xbf16, #tpu.memory_space<vmem>>, vector<80x32xbf16>
    %cst_139 = arith.constant dense<0.000000e+00> : vector<2x32xf32>
    %545 = tpu.matmul %543, %544, %cst_139 {dimension_numbers = #tpu.dot_dimension_numbers<[1], [0], [0], [1], [0, 0, 1, 1], [], []>} : vector<2x80xbf16>, vector<80x32xbf16>, vector<2x32xf32> -> vector<2x32xf32>
    %c0_140 = arith.constant 0 : index
    %c0_141 = arith.constant 0 : index
    %546 = vector.load %arg8[%c0_140, %c0_141] : memref<1x32xf32, #tpu.memory_space<vmem>>, vector<1x32xf32>
    %547 = vector.broadcast %546 : vector<1x32xf32> to vector<2x32xf32>
    %548 = arith.addf %545, %547 : vector<2x32xf32>
    %cst_142 = arith.constant dense<0.000000e+00> : vector<32xf32>
    %549 = vector.multi_reduction <add>, %548, %cst_142 [0] : vector<2x32xf32> to vector<32xf32>
    %550 = vector.shape_cast %549 : vector<32xf32> to vector<1x32xf32>
    %cst_143 = arith.constant 2.000000e+00 : f32
    %551 = vector.broadcast %cst_143 : f32 to vector<1x32xf32>
    %552 = arith.divf %550, %551 : vector<1x32xf32>
    %553 = vector.broadcast %552 : vector<1x32xf32> to vector<2x32xf32>
    %554 = arith.subf %548, %553 : vector<2x32xf32>
    %555 = arith.mulf %554, %554 : vector<2x32xf32>
    %cst_144 = arith.constant dense<0.000000e+00> : vector<32xf32>
    %556 = vector.multi_reduction <add>, %555, %cst_144 [0] : vector<2x32xf32> to vector<32xf32>
    %557 = vector.shape_cast %556 : vector<32xf32> to vector<1x32xf32>
    %cst_145 = arith.constant 2.000000e+00 : f32
    %558 = vector.broadcast %cst_145 : f32 to vector<1x32xf32>
    %559 = arith.divf %557, %558 : vector<1x32xf32>
    %560 = vector.broadcast %552 : vector<1x32xf32> to vector<2x32xf32>
    %561 = arith.subf %548, %560 : vector<2x32xf32>
    %cst_146 = arith.constant 9.99999974E-6 : f32
    %562 = vector.broadcast %cst_146 : f32 to vector<1x32xf32>
    %563 = arith.addf %559, %562 : vector<1x32xf32>
    %564 = math.rsqrt %563 : vector<1x32xf32>
    %565 = vector.broadcast %564 : vector<1x32xf32> to vector<2x32xf32>
    %566 = arith.mulf %561, %565 : vector<2x32xf32>
    %c0_147 = arith.constant 0 : index
    %c0_148 = arith.constant 0 : index
    %567 = vector.load %arg9[%c0_147, %c0_148] : memref<1x32xf32, #tpu.memory_space<vmem>>, vector<1x32xf32>
    %568 = vector.broadcast %567 : vector<1x32xf32> to vector<2x32xf32>
    %569 = arith.mulf %566, %568 : vector<2x32xf32>
    %c0_149 = arith.constant 0 : index
    %c0_150 = arith.constant 0 : index
    %570 = vector.load %arg10[%c0_149, %c0_150] : memref<1x32xf32, #tpu.memory_space<vmem>>, vector<1x32xf32>
    %571 = vector.broadcast %570 : vector<1x32xf32> to vector<2x32xf32>
    %572 = arith.addf %569, %571 : vector<2x32xf32>
    %cst_151 = arith.constant 0.000000e+00 : f32
    %573 = vector.broadcast %cst_151 : f32 to vector<2x32xf32>
    %574 = arith.maximumf %572, %573 : vector<2x32xf32>
    %575 = arith.truncf %574 : vector<2x32xf32> to vector<2x32xbf16>
    %c0_152 = arith.constant 0 : index
    %c0_153 = arith.constant 0 : index
    %576 = vector.load %arg11[%c0_152, %c0_153] : memref<32x4xbf16, #tpu.memory_space<vmem>>, vector<32x4xbf16>
    %cst_154 = arith.constant dense<0.000000e+00> : vector<2x4xf32>
    %577 = tpu.matmul %575, %576, %cst_154 {dimension_numbers = #tpu.dot_dimension_numbers<[1], [0], [0], [1], [0, 0, 1, 1], [], []>} : vector<2x32xbf16>, vector<32x4xbf16>, vector<2x4xf32> -> vector<2x4xf32>
    %c0_155 = arith.constant 0 : index
    %c0_156 = arith.constant 0 : index
    %578 = vector.load %arg12[%c0_155, %c0_156] : memref<1x4xf32, #tpu.memory_space<vmem>>, vector<1x4xf32>
    %579 = vector.broadcast %578 : vector<1x4xf32> to vector<2x4xf32>
    %580 = arith.addf %577, %579 : vector<2x4xf32>
    %c0_157 = arith.constant 0 : index
    %c0_158 = arith.constant 0 : index
    %581 = vector.load %arg13[%c0_157, %c0_158] : memref<2x4xf32, #tpu.memory_space<vmem>>, vector<2x4xf32>
    tpu.vector_store %arg13[%c0_157, %c0_158], %580 {strides = array<i32>} : memref<2x4xf32, #tpu.memory_space<vmem>>, vector<2x4xf32>,
    return
  }
}

</mosaic_0001>

<bundles_post_ra>
// kernel: textrcnn_forward.1
= control target key start
LH: loop header
LB: loop body
LE: loop exit
PB: predicated region body
PF: predicated region fallthrough
CT: control target
= control target key end

     0   :  { %v2623_v1 = vmov 0   ;;  %v2624_v4 = vmov 0.0   ;;  %vm2625_vm0 = vmmov 0   ;;  %s3282_s0 = inlined_call_operand.vmem [shape: f32[2,8,16], index: 0, kind: input, shape index: {}]   ;;  %s3283_s1 = inlined_call_operand.vmem [shape: f32[2,8,1], index: 1, kind: input, shape index: {}]   ;;  %s3284_s2 = inlined_call_operand.vmem [shape: bf16[16,256], index: 2, kind: input, shape index: {}]   ;;  %s3285_s3 = inlined_call_operand.vmem [shape: bf16[32,128], index: 3, kind: input, shape index: {}]   ;;  %s3286_s4 = inlined_call_operand.vmem [shape: bf16[32,128], index: 4, kind: input, shape index: {}]   ;;  %s3287_s5 = inlined_call_operand.vmem [shape: f32[1,128], index: 5, kind: input, shape index: {}]   ;;  %s3288_s6 = inlined_call_operand.vmem [shape: f32[1,128], index: 6, kind: input, shape index: {}]   ;;  %s3289_s7 = inlined_call_operand.vmem [shape: bf16[80,32], index: 7, kind: input, shape index: {}]   ;;  %s3290_s8 = inlined_call_operand.vmem [shape: f32[1,32], index: 8, kind: input, shape index: {}]   ;;  %s3291_s9 = inlined_call_operand.vmem [shape: f32[1,32], index: 9, kind: input, shape index: {}]   ;;  %s3292_s10 = inlined_call_operand.vmem [shape: f32[1,32], index: 10, kind: input, shape index: {}]   ;;  %s3293_s11 = inlined_call_operand.vmem [shape: bf16[32,4], index: 11, kind: input, shape index: {}]   ;;  %s3294_s12 = inlined_call_operand.vmem [shape: f32[1,4], index: 12, kind: input, shape index: {}]   ;;  %s3295_s13 = inlined_call_operand.hbm [shape: f32[2,4], index: 13, kind: output, shape index: {}]  }
   0x1   :  { %v48_v0 = vld [vmem:[%s3283_s1] sm:$0xff]  ;;  %2311 = vset.pattern.permute.xlu0 %v2623_v1  ;;  %v49_v2 = vld [vmem:[%s3283_s1 + $0x8] sm:$0xff]  ;;  %127 = vmatprep.mubr.bf16.mxu0 %v2623_v1 }
   0x2   :  { %v2708_v3 = vld [vmem:[%s3285_s3] sm:$0xff]   ;;  %52 = vperm.xlu0 %2311, %v48_v0   ;;  %2155 = vmatprep.subr.bf16.mxu1 %v2624_v4  ;;  %v2722_v7 = vld [vmem:[%s3285_s3 + $0x8] sm:$0xff]  }
   0x3   :  { %2156 = vmatpush3.bf16.msra.mxu1 %v2708_v3  ;;  %v2318_v5 = vld [vmem:[%s3284_s2 + $0x4] ss:$8 sps:$4 sm:$0xff]   ;;  %v2320_v6 = vld [vmem:[%s3284_s2] ss:$8 sps:$4 sm:$0xff]   ;;  %2159 = vmatprep.mubr.msk.bf16.mxu1 %vm2625_vm0, %v2624_v4 }
   0x4   :  { %2157 = vmatprep.subr.bf16.mxu1 %v2624_v4  ;;  %95 = vmatprep.subr.bf16.mxu0 %v2318_v5 }
   0x5   :  { %96 = vmatpush1.bf16.msra.mxu0 %v2320_v6 }
   0x6   :  { %57 = vperm.xlu0 %2311, %v49_v2   ;;  %2163 = vmatprep.subr.bf16.mxu0 %v2624_v4 }
   0x7   :  { %2158 = vmatpush3.bf16.msra.mxu1 %v2722_v7 }
   0x8   :  { %2171 = vmatprep.subr.bf16.mxu1 %v2624_v4 }
   0xa   :  { %2160 = vmatmul.mubr.bf16.vlgmr.msra.gmra.mrb[0].mxu1 %v2623_v1 }
   0xb   :  { %2172 = vmatpush3.bf16.msra.mxu1 %v2708_v3  ;;  %2175 = vmatprep.mubr.msk.bf16.mxu1 %vm2625_vm0, %v2624_v4 }
   0xc   :  { %18 = vsyncpa [#allocation3], 0  ;;  %2173 = vmatprep.subr.bf16.mxu1 %v2624_v4  ;;  %v46_v8 = vld [vmem:[%s3282_s0] sm:$0xff]  ;;  %v47_v11 = vld [vmem:[%s3282_s0 + $0x8] sm:$0xff]  ;;  %vm64_vm1 = vcmask 130048   ;;  %vm235_vm2 = vcmask 1041409  }
   0xd   :  { %v2744_v14 = vld [vmem:[%s3286_s4] sm:$0xff]   ;;  %v2751_v16 = vld [vmem:[%s3286_s4 + $0x8] sm:$0xff]   ;;  %s2626_s29 = smov 64   ;;  %s2627_s30 = smov 32   ;;  %vm154_vm6 = vcmask 261120   ;;  %vm1813_vm7 = vcmask 523264  }
   0xe   :  { %v2774_v40 = vld [vmem:[%s3287_s5] ss:$0 sm:$0xff]  ;;  %vm1863_vm8 = vcmask 654336   ;;  %vm1907_vm9 = vcmask 254976   ;;  %s2628_s2 = smov [#allocation2]   ;;  %vm2014_vm10 = vcmask 25600  }
   0xf   :  { %2174 = vmatpush3.bf16.msra.mxu1 %v2722_v7  ;;  %v2789_v54 = vld [vmem:[%s3288_s6] ss:$0 sm:$0xff]  ;;  %s2022_s19 = sshll.u32 %s2628_s2, 4  ;;  %s2023_s19 = int_to_ptr.vmem [resolvable:$true] %s2022_s19 }
  0x10   :  { %2187 = vmatprep.subr.bf16.mxu1 %v2624_v4  ;;  %p2604_p1 = scmp.lt.s32.totalorder %s2023_s19, %s2023_s19 }
  0x81   :  { %v53_v9 = vpop.permute.xlu0 %52 }
  0x82   :  { %v60_v10 = vmul.f32 %v53_v9, %v46_v8 }
  0x84   :  { %2331 = vtanh.f32 %v60_v10 }
  0x85   :  { %v58_v12 = vpop.permute.xlu0 %57 }
  0x86   :  { %v61_v13 = vmul.f32 %v58_v12, %v47_v11 }
  0x88   :  { %2333 = vtanh.f32 %v61_v13  ;;  %v79_v15 = vpack.c.bf16 %v61_v13, %v60_v10  ;;  %v213_v10 = vlaneseq }
  0x8a   :  { %2032 = vmatmul.mubr.msk.bf16.vlgmr.msra.gmra.mrb[0].mxu0 %vm64_vm1, %v79_v15  ;;  %v214_v13 = vand.u32 127, %v213_v10 }
  0x8b   :  { %2164 = vmatpush3.bf16.msra.mxu0 %v2744_v14  ;;  %2167 = vmatprep.mubr.msk.bf16.mxu0 %vm2625_vm0, %v2624_v4 }
  0x8c   :  { %2165 = vmatprep.subr.bf16.mxu0 %v2624_v4  ;;  %vm215_vm3 = vcmp.ge.s32.totalorder %v214_v13, 64  ;;  %vm216_vm4 = vcmp.lt.s32.totalorder %v214_v13, 96 }
  0x8d   :  { %vm2797_vm5 = vmand %vm215_vm3, %vm216_vm4 }
  0x8e   :  { %v2332_v17 = vpop.eup %2331 }
  0x8f   :  { %v65_v18 = vsel %vm64_vm1, %v2332_v17, -inf  ;;  %2166 = vmatpush3.bf16.msra.mxu0 %v2751_v16 }
  0x90   :  { %v66_v19 = vrot.slane %v65_v18, 4  ;;  %2179 = vmatprep.subr.bf16.mxu0 %v2624_v4 }
  0x92   :  { %v2334_v20 = vpop.eup %2333  ;;  %v67_v21 = vmax.f32 %v65_v18, %v66_v19  ;;  %2168 = vmatmul.mubr.bf16.vlgmr.msra.gmra.mrb[4].mxu0 %v2623_v1 }
  0x93   :  { %v72_v22 = vsel %vm64_vm1, %v2334_v20, -inf  ;;  %2180 = vmatpush3.bf16.msra.mxu0 %v2744_v14  ;;  %2183 = vmatprep.mubr.msk.bf16.mxu0 %vm2625_vm0, %v2624_v4 }
  0x94   :  { %v68_v23 = vrot.slane %v67_v21, 2  ;;  %v73_v24 = vrot.slane %v72_v22, 4  ;;  %2181 = vmatprep.subr.bf16.mxu0 %v2624_v4 }
  0x96   :  { %v69_v25 = vmax.f32 %v67_v21, %v68_v23  ;;  %v74_v26 = vmax.f32 %v72_v22, %v73_v24 }
  0x97   :  { %2182 = vmatpush3.bf16.msra.mxu0 %v2751_v16 }
  0x98   :  { %v75_v27 = vrot.slane %v74_v26, 2  ;;  %2195 = vmatprep.subr.bf16.mxu0 %v2624_v4  ;;  %v70_v28 = vrot.slane %v69_v25, 1 }
  0x9a   :  { %v76_v29 = vmax.f32 %v74_v26, %v75_v27  ;;  %v71_v31 = vmax.f32 %v69_v25, %v70_v28 }
  0x9c   :  { %v77_v30 = vrot.slane %v76_v29, 1 }
  0x9e   :  { %v78_v32 = vmax.f32 %v76_v29, %v77_v30 }
  0xa0   :  { %v2767_v33 = vsel %vm235_vm2, %v78_v32, %v71_v31 }
  0xdd   :  { %v192_v34 = vpop.f32.mrb[0].mxu1 }
  0xde   :  { %v2161_v35 = vpop.f32.mrb[1].mxu1  ;;  %v199_v38 = vrot.slane %v192_v34, 1 }
  0xdf   :  { %v195_v36 = vpop.f32.mrb[2].mxu1 }
  0xe0   :  { %v2162_v37 = vpop.f32.mrb[3].mxu1 }
 0x15d   :  { %v2769_v39 = vpop.f32.mrb[0].mxu0 }
 0x15e   :  { %v202_v41 = vadd.f32 %v192_v34, %v2769_v39  ;;  %v2777_v42 = vpop.f32.mrb[1].mxu0 }
 0x15f   :  { %v2779_v43 = vpop.f32.mrb[2].mxu0 }
 0x160   :  { %v211_v44 = vadd.f32 %v2774_v40, %v202_v41  ;;  %v2782_v45 = vpop.f32.mrb[3].mxu0  ;;  %v203_v46 = vadd.f32 %v199_v38, %v2779_v43 }
 0x162   :  { %v2036_v47 = vmul.f32 -1.442695, %v211_v44  ;;  %v212_v48 = vadd.f32 %v2774_v40, %v203_v46 }
 0x164   :  { %2335 = vpow2.f32 %v2036_v47  ;;  %v2037_v49 = vmul.f32 -1.442695, %v212_v48 }
 0x165   :  { %v311_v50 = vpop.f32.mrb[4].mxu0  ;;  %2337 = vtanh.f32 %v212_v48 }
 0x166   :  { %v318_v51 = vrot.slane %v311_v50, 1  ;;  %v319_v52 = vrot.slane %v311_v50, 2  ;;  %v2169_v53 = vpop.f32.mrb[5].mxu0  ;;  %2339 = vpow2.f32 %v2037_v49 }
 0x167   :  { %2341 = vtanh.f32 %v211_v44  ;;  %v314_v55 = vpop.f32.mrb[6].mxu0 }
 0x168   :  { %v322_v56 = vadd.f32 %v318_v51, %v2777_v42  ;;  %v323_v57 = vadd.f32 %v319_v52, %v2782_v45  ;;  %v2170_v58 = vpop.f32.mrb[7].mxu0 }
 0x16a   :  { %v331_v59 = vadd.f32 %v2789_v54, %v322_v56  ;;  %v332_v60 = vadd.f32 %v2789_v54, %v323_v57 }
 0x16c   :  { %2343 = vtanh.f32 %v331_v59  ;;  %v2041_v61 = vmul.f32 -1.442695, %v331_v59  ;;  %v2042_v62 = vmul.f32 -1.442695, %v332_v60 }
 0x16d   :  { %2345 = vtanh.f32 %v332_v60 }
 0x16e   :  { %v2336_v63 = vpop.eup %2335  ;;  %2347 = vpow2.f32 %v2041_v61 }
 0x16f   :  { %v2338_v0 = vpop.eup %2337  ;;  %2349 = vpow2.f32 %v2042_v62  ;;  %v226_v6 = vadd.f32 1.0, %v2336_v63 }
 0x170   :  { %v2340_v1 = vpop.eup %2339  ;;  %v234_v2 = vrot.slane %v2338_v0, 7 }
 0x171   :  { %v2342_v5 = vpop.eup %2341  ;;  %v227_v8 = vadd.f32 1.0, %v2340_v1 }
 0x172   :  { %v236_v9 = vsel %vm235_vm2, %v234_v2, %v2342_v5 }
 0x173   :  { %2351 = vrcp.f32 %v227_v8 }
 0x174   :  { %2353 = vrcp.f32 %v226_v6 }
 0x176   :  { %v2344_v11 = vpop.eup %2343 }
 0x177   :  { %v2346_v12 = vpop.eup %2345  ;;  %v349_v15 = vrot.slane %v2344_v11, 7 }
 0x178   :  { %v2348_v17 = vpop.eup %2347  ;;  %v350_v18 = vrot.slane %v2346_v12, 6 }
 0x179   :  { %v2350_v19 = vpop.eup %2349  ;;  %v341_v20 = vadd.f32 1.0, %v2348_v17 }
 0x17a   :  { %v342_v21 = vadd.f32 1.0, %v2350_v19  ;;  %v351_v22 = vsel %vm235_vm2, %v350_v18, %v349_v15 }
 0x17b   :  { %2355 = vrcp.f32 %v341_v20 }
 0x17c   :  { %2357 = vrcp.f32 %v342_v21 }
 0x17d   :  { %v2352_v23 = vpop.eup %2351 }
 0x17e   :  { %v240_v25 = vrot.slane %v2352_v23, 7  ;;  %v2354_v26 = vpop.eup %2353 }
 0x180   :  { %v241_v27 = vsel %vm235_vm2, %v240_v25, %v2354_v26 }
 0x181   :  { %v243_v28 = vsel %vm2797_vm5, %v236_v9, %v241_v27 }
 0x182   :  { %246 = vrot.lane.b32.xlu1 %v243_v28, %s2626_s29  ;;  %v244_v44 = vmul.f32 0.0, %v243_v28 }
 0x185   :  { %v2356_v29 = vpop.eup %2355 }
 0x186   :  { %v2358_v30 = vpop.eup %2357  ;;  %v355_v31 = vrot.slane %v2356_v29, 7 }
 0x187   :  { %v356_v32 = vrot.slane %v2358_v30, 6 }
 0x189   :  { %v357_v34 = vsel %vm235_vm2, %v356_v32, %v355_v31 }
 0x18a   :  { %v359_v35 = vsel %vm2797_vm5, %v351_v22, %v357_v34 }
 0x18b   :  { %362 = vrot.lane.b32.xlu1 %v359_v35, %s2626_s29  ;;  %v360_v48 = vmul.f32 0.0, %v359_v35 }
 0x1f4   :  { %v247_v36 = vpop.permute.xlu1 %246 }
 0x1f5   :  { %v249_v37 = vmul.f32 %v247_v36, %v243_v28 }
 0x1f7   :  { %251 = vrot.lane.b32.xlu0 %v249_v37, %s2627_s30 }
 0x1fd   :  { %v363_v38 = vpop.permute.xlu1 %362 }
 0x1fe   :  { %v365_v41 = vmul.f32 %v363_v38, %v359_v35 }
 0x200   :  { %367 = vrot.lane.b32.xlu1 %v365_v41, %s2627_s30 }
 0x269   :  { %v252_v46 = vpop.permute.xlu0 %251 }
 0x26a   :  { %v2811_v47 = vadd.f32 %v252_v46, %v244_v44 }
 0x26c   :  { %2359 = vtanh.f32 %v2811_v47 }
 0x272   :  { %v368_v49 = vpop.permute.xlu1 %367 }
 0x273   :  { %v2814_v50 = vadd.f32 %v368_v49, %v360_v48 }
 0x275   :  { %2361 = vtanh.f32 %v2814_v50 }
 0x276   :  { %v2360_v51 = vpop.eup %2359 }
 0x277   :  { %257 = vrot.lane.b32.xlu0 %v2360_v51, %s2626_s29 }
 0x27f   :  { %v2362_v52 = vpop.eup %2361 }
 0x280   :  { %373 = vrot.lane.b32.xlu1 %v2362_v52, %s2626_s29 }
 0x2e9   :  { %v258_v53 = vpop.permute.xlu0 %257 }
 0x2ea   :  { %v2819_v55 = vmul.f32 %v258_v53, %v243_v28 }
 0x2ec   :  { %v379_v56 = vpack.c.bf16 %v2819_v55, %v2819_v55 }
 0x2ee   :  { %381 = vrot.lane.b32.xlu0 %v379_v56, %s2627_s30 }
 0x2f2   :  { %v374_v57 = vpop.permute.xlu1 %373 }
 0x2f3   :  { %v2824_v58 = vmul.f32 %v374_v57, %v359_v35 }
 0x2f5   :  { %v476_v59 = vpack.c.bf16 %v2824_v58, %v2824_v58 }
 0x2f7   :  { %478 = vrot.lane.b32.xlu1 %v476_v59, %s2627_s30 }
 0x360   :  { %v382_v60 = vpop.permute.xlu0 %381 }
 0x361   :  { %2176 = vmatmul.mubr.msk.bf16.vlgmr.msra.gmra.mrb[4].mxu1 %vm154_vm6, %v382_v60 }
 0x362   :  { %2188 = vmatpush3.bf16.msra.mxu1 %v2708_v3  ;;  %2191 = vmatprep.mubr.msk.bf16.mxu1 %vm2625_vm0, %v2624_v4 }
 0x363   :  { %2189 = vmatprep.subr.bf16.mxu1 %v2624_v4 }
 0x366   :  { %2190 = vmatpush3.bf16.msra.mxu1 %v2722_v7 }
 0x367   :  { %2203 = vmatprep.subr.bf16.mxu1 %v2624_v4 }
 0x369   :  { %v479_v61 = vpop.permute.xlu1 %478 }
 0x36a   :  { %2184 = vmatmul.mubr.msk.bf16.vlgmr.msra.gmra.mrb[8].mxu0 %vm154_vm6, %v479_v61 }
 0x36b   :  { %2196 = vmatpush3.bf16.msra.mxu0 %v2744_v14  ;;  %2199 = vmatprep.mubr.msk.bf16.mxu0 %vm2625_vm0, %v2624_v4 }
 0x36c   :  { %2197 = vmatprep.subr.bf16.mxu0 %v2624_v4 }
 0x36f   :  { %2198 = vmatpush3.bf16.msra.mxu0 %v2751_v16 }
 0x370   :  { %2211 = vmatprep.subr.bf16.mxu0 %v2624_v4 }
 0x434   :  { %v420_v62 = vpop.f32.mrb[4].mxu1 }
 0x435   :  { %v427_v63 = vrot.slane %v420_v62, 7  ;;  %v431_v0 = vadd.f32 %v420_v62, %v2779_v43  ;;  %v2177_v1 = vpop.f32.mrb[5].mxu1 }
 0x436   :  { %v423_v2 = vpop.f32.mrb[6].mxu1 }
 0x437   :  { %v430_v5 = vadd.f32 %v427_v63, %v2769_v39  ;;  %v433_v6 = vadd.f32 %v2774_v40, %v431_v0  ;;  %v2178_v8 = vpop.f32.mrb[7].mxu1 }
 0x439   :  { %v432_v9 = vadd.f32 %v2774_v40, %v430_v5  ;;  %v2045_v10 = vmul.f32 -1.442695, %v433_v6  ;;  %2363 = vtanh.f32 %v433_v6 }
 0x43b   :  { %2365 = vtanh.f32 %v432_v9  ;;  %v2044_v11 = vmul.f32 -1.442695, %v432_v9 }
 0x43c   :  { %2367 = vpow2.f32 %v2045_v10 }
 0x43d   :  { %2369 = vpow2.f32 %v2044_v11  ;;  %v517_v12 = vpop.f32.mrb[8].mxu0 }
 0x43e   :  { %v524_v13 = vrot.slane %v517_v12, 2  ;;  %v525_v15 = vrot.slane %v517_v12, 3  ;;  %v2185_v17 = vpop.f32.mrb[9].mxu0 }
 0x43f   :  { %v520_v18 = vpop.f32.mrb[10].mxu0 }
 0x440   :  { %v528_v19 = vadd.f32 %v524_v13, %v2777_v42  ;;  %v529_v20 = vadd.f32 %v525_v15, %v2782_v45  ;;  %v2186_v21 = vpop.f32.mrb[11].mxu0 }
 0x442   :  { %v530_v22 = vadd.f32 %v2789_v54, %v528_v19  ;;  %v531_v23 = vadd.f32 %v2789_v54, %v529_v20 }
 0x443   :  { %v2364_v25 = vpop.eup %2363 }
 0x444   :  { %2371 = vtanh.f32 %v530_v22  ;;  %v2047_v26 = vmul.f32 -1.442695, %v530_v22  ;;  %v2048_v27 = vmul.f32 -1.442695, %v531_v23 }
 0x445   :  { %v2366_v28 = vpop.eup %2365  ;;  %2373 = vtanh.f32 %v531_v23 }
 0x446   :  { %v2368_v29 = vpop.eup %2367  ;;  %2375 = vpow2.f32 %v2047_v26  ;;  %v450_v30 = vrot.slane %v2366_v28, 1 }
 0x447   :  { %v2370_v31 = vpop.eup %2369  ;;  %2377 = vpow2.f32 %v2048_v27  ;;  %v443_v34 = vadd.f32 1.0, %v2368_v29 }
 0x448   :  { %v442_v32 = vadd.f32 1.0, %v2370_v31  ;;  %v451_v35 = vsel %vm235_vm2, %v2364_v25, %v450_v30 }
 0x44a   :  { %2379 = vrcp.f32 %v442_v32 }
 0x44b   :  { %2381 = vrcp.f32 %v443_v34 }
 0x44e   :  { %v2372_v36 = vpop.eup %2371 }
 0x44f   :  { %v2374_v37 = vpop.eup %2373  ;;  %v548_v38 = vrot.slane %v2372_v36, 6 }
 0x450   :  { %v2376_v41 = vpop.eup %2375  ;;  %v549_v44 = vrot.slane %v2374_v37, 5 }
 0x451   :  { %v2378_v46 = vpop.eup %2377  ;;  %v540_v48 = vadd.f32 1.0, %v2376_v41 }
 0x452   :  { %v541_v49 = vadd.f32 1.0, %v2378_v46  ;;  %v550_v51 = vsel %vm235_vm2, %v549_v44, %v548_v38 }
 0x453   :  { %2383 = vrcp.f32 %v540_v48 }
 0x454   :  { %v2380_v52 = vpop.eup %2379  ;;  %2385 = vrcp.f32 %v541_v49 }
 0x455   :  { %v455_v53 = vrot.slane %v2380_v52, 1  ;;  %v2382_v56 = vpop.eup %2381 }
 0x457   :  { %v456_v57 = vsel %vm235_vm2, %v2382_v56, %v455_v53 }
 0x458   :  { %v458_v59 = vsel %vm2797_vm5, %v451_v35, %v456_v57 }
 0x459   :  { %461 = vrot.lane.b32.xlu0 %v458_v59, %s2626_s29  ;;  %v459_v9 = vmul.f32 %v458_v59, %v2811_v47 }
 0x45d   :  { %v2384_v60 = vpop.eup %2383 }
 0x45e   :  { %v2386_v61 = vpop.eup %2385  ;;  %v554_v62 = vrot.slane %v2384_v60, 6 }
 0x45f   :  { %v555_v63 = vrot.slane %v2386_v61, 5 }
 0x461   :  { %v556_v0 = vsel %vm235_vm2, %v555_v63, %v554_v62 }
 0x462   :  { %v558_v1 = vsel %vm2797_vm5, %v550_v51, %v556_v0 }
 0x463   :  { %561 = vrot.lane.b32.xlu1 %v558_v1, %s2626_s29  ;;  %v559_v12 = vmul.f32 %v558_v1, %v2814_v50 }
 0x4cb   :  { %v462_v2 = vpop.permute.xlu0 %461 }
 0x4cc   :  { %v464_v5 = vmul.f32 %v462_v2, %v458_v59 }
 0x4ce   :  { %466 = vrot.lane.b32.xlu0 %v464_v5, %s2627_s30 }
 0x4d5   :  { %v562_v6 = vpop.permute.xlu1 %561 }
 0x4d6   :  { %v564_v8 = vmul.f32 %v562_v6, %v558_v1 }
 0x4d8   :  { %566 = vrot.lane.b32.xlu1 %v564_v8, %s2627_s30 }
 0x540   :  { %v467_v10 = vpop.permute.xlu0 %466 }
 0x541   :  { %v2864_v11 = vadd.f32 %v467_v10, %v459_v9 }
 0x543   :  { %2387 = vtanh.f32 %v2864_v11 }
 0x54a   :  { %v567_v13 = vpop.permute.xlu1 %566 }
 0x54b   :  { %v2868_v15 = vadd.f32 %v567_v13, %v559_v12 }
 0x54d   :  { %v2388_v17 = vpop.eup %2387  ;;  %2389 = vtanh.f32 %v2868_v15 }
 0x54e   :  { %472 = vrot.lane.b32.xlu0 %v2388_v17, %s2626_s29  ;;  %2391 = vtanh.f32 %v2819_v55 }
 0x557   :  { %v2390_v18 = vpop.eup %2389 }
 0x558   :  { %572 = vrot.lane.b32.xlu1 %v2390_v18, %s2626_s29  ;;  %v2875_v22 = vpop.eup %2391 }
 0x5c0   :  { %v473_v19 = vpop.permute.xlu0 %472 }
 0x5c1   :  { %v475_v47 = vmul.f32 %v473_v19, %v458_v59 }
 0x5c3   :  { %2393 = vtanh.f32 %v475_v47  ;;  %v580_v20 = vpack.c.bf16 %v475_v47, %v475_v47 }
 0x5c4   :  { %2395 = vtanh.f32 %v2824_v58 }
 0x5c5   :  { %582 = vrot.lane.b32.xlu0 %v580_v20, %s2627_s30 }
 0x5ca   :  { %v573_v50 = vpop.permute.xlu1 %572 }
 0x5cb   :  { %v575_v21 = vmul.f32 %v573_v50, %v558_v1 }
 0x5cd   :  { %v2878_v23 = vpop.eup %2393  ;;  %2397 = vtanh.f32 %v575_v21  ;;  %v680_v25 = vpack.c.bf16 %v575_v21, %v575_v21 }
 0x5ce   :  { %v577_v26 = vmax.f32 %v2875_v22, %v2878_v23  ;;  %v2883_v55 = vpop.eup %2395 }
 0x5cf   :  { %682 = vrot.lane.b32.xlu1 %v680_v25, %s2627_s30 }
 0x5d7   :  { %v2885_v27 = vpop.eup %2397 }
 0x5d8   :  { %v579_v28 = vmax.f32 %v2883_v55, %v2885_v27 }
 0x637   :  { %v583_v29 = vpop.permute.xlu0 %582 }
 0x638   :  { %2192 = vmatmul.mubr.msk.bf16.vlgmr.msra.gmra.mrb[8].mxu1 %vm154_vm6, %v583_v29 }
 0x639   :  { %2204 = vmatpush3.bf16.msra.mxu1 %v2708_v3  ;;  %2207 = vmatprep.mubr.msk.bf16.mxu1 %vm2625_vm0, %v2624_v4 }
 0x63a   :  { %2205 = vmatprep.subr.bf16.mxu1 %v2624_v4 }
 0x63d   :  { %2206 = vmatpush3.bf16.msra.mxu1 %v2722_v7 }
 0x63e   :  { %2219 = vmatprep.subr.bf16.mxu1 %v2624_v4 }
 0x641   :  { %v683_v58 = vpop.permute.xlu1 %682 }
 0x642   :  { %2200 = vmatmul.mubr.msk.bf16.vlgmr.msra.gmra.mrb[12].mxu0 %vm154_vm6, %v683_v58 }
 0x643   :  { %2212 = vmatpush3.bf16.msra.mxu0 %v2744_v14  ;;  %2215 = vmatprep.mubr.msk.bf16.mxu0 %vm2625_vm0, %v2624_v4 }
 0x644   :  { %2213 = vmatprep.subr.bf16.mxu0 %v2624_v4 }
 0x647   :  { %2214 = vmatpush3.bf16.msra.mxu0 %v2751_v16 }
 0x648   :  { %2227 = vmatprep.subr.bf16.mxu0 %v2624_v4 }
 0x70b   :  { %v621_v30 = vpop.f32.mrb[8].mxu1 }
 0x70c   :  { %v628_v31 = vrot.slane %v621_v30, 6  ;;  %v629_v32 = vrot.slane %v621_v30, 7  ;;  %v2193_v34 = vpop.f32.mrb[9].mxu1 }
 0x70d   :  { %v624_v35 = vpop.f32.mrb[10].mxu1 }
 0x70e   :  { %v632_v36 = vadd.f32 %v628_v31, %v2769_v39  ;;  %v633_v37 = vadd.f32 %v629_v32, %v2779_v43  ;;  %v2194_v38 = vpop.f32.mrb[11].mxu1 }
 0x710   :  { %v634_v41 = vadd.f32 %v2774_v40, %v632_v36  ;;  %v635_v44 = vadd.f32 %v2774_v40, %v633_v37 }
 0x712   :  { %2399 = vtanh.f32 %v634_v41  ;;  %v2050_v46 = vmul.f32 -1.442695, %v634_v41  ;;  %v2051_v48 = vmul.f32 -1.442695, %v635_v44 }
 0x713   :  { %2401 = vtanh.f32 %v635_v44 }
 0x714   :  { %2403 = vpow2.f32 %v2050_v46 }
 0x715   :  { %2405 = vpow2.f32 %v2051_v48  ;;  %v721_v49 = vpop.f32.mrb[12].mxu0 }
 0x716   :  { %v728_v51 = vrot.slane %v721_v49, 3  ;;  %v729_v52 = vrot.slane %v721_v49, 4  ;;  %v2201_v53 = vpop.f32.mrb[13].mxu0 }
 0x717   :  { %v724_v56 = vpop.f32.mrb[14].mxu0 }
 0x718   :  { %v732_v57 = vadd.f32 %v728_v51, %v2777_v42  ;;  %v733_v59 = vadd.f32 %v729_v52, %v2782_v45  ;;  %v2202_v60 = vpop.f32.mrb[15].mxu0 }
 0x71a   :  { %v734_v61 = vadd.f32 %v2789_v54, %v732_v57  ;;  %v735_v62 = vadd.f32 %v2789_v54, %v733_v59 }
 0x71c   :  { %v2400_v63 = vpop.eup %2399  ;;  %2407 = vtanh.f32 %v734_v61  ;;  %v2053_v0 = vmul.f32 -1.442695, %v734_v61  ;;  %v2054_v1 = vmul.f32 -1.442695, %v735_v62 }
 0x71d   :  { %v2402_v2 = vpop.eup %2401  ;;  %2409 = vtanh.f32 %v735_v62  ;;  %v652_v5 = vrot.slane %v2400_v63, 2 }
 0x71e   :  { %v2404_v6 = vpop.eup %2403  ;;  %2411 = vpow2.f32 %v2053_v0  ;;  %v653_v8 = vrot.slane %v2402_v2, 1 }
 0x71f   :  { %v2406_v9 = vpop.eup %2405  ;;  %v644_v10 = vadd.f32 1.0, %v2404_v6  ;;  %2413 = vpow2.f32 %v2054_v1 }
 0x720   :  { %v645_v12 = vadd.f32 1.0, %v2406_v9  ;;  %v654_v13 = vsel %vm235_vm2, %v653_v8, %v652_v5 }
 0x721   :  { %2415 = vrcp.f32 %v644_v10 }
 0x722   :  { %2417 = vrcp.f32 %v645_v12 }
 0x726   :  { %v2408_v17 = vpop.eup %2407 }
 0x727   :  { %v2410_v18 = vpop.eup %2409  ;;  %v752_v19 = vrot.slane %v2408_v17, 5 }
 0x728   :  { %v2412_v47 = vpop.eup %2411  ;;  %v753_v20 = vrot.slane %v2410_v18, 4 }
 0x729   :  { %v2414_v50 = vpop.eup %2413  ;;  %v744_v21 = vadd.f32 1.0, %v2412_v47 }
 0x72a   :  { %v745_v25 = vadd.f32 1.0, %v2414_v50  ;;  %v754_v29 = vsel %vm235_vm2, %v753_v20, %v752_v19 }
 0x72b   :  { %v2416_v58 = vpop.eup %2415  ;;  %2419 = vrcp.f32 %v744_v21 }
 0x72c   :  { %v2418_v30 = vpop.eup %2417  ;;  %2421 = vrcp.f32 %v745_v25  ;;  %v658_v31 = vrot.slane %v2416_v58, 2 }
 0x72d   :  { %v659_v32 = vrot.slane %v2418_v30, 1 }
 0x72f   :  { %v660_v34 = vsel %vm235_vm2, %v659_v32, %v658_v31 }
 0x730   :  { %v662_v35 = vsel %vm2797_vm5, %v654_v13, %v660_v34 }
 0x731   :  { %665 = vrot.lane.b32.xlu0 %v662_v35, %s2626_s29  ;;  %v663_v53 = vmul.f32 %v662_v35, %v2864_v11 }
 0x735   :  { %v2420_v36 = vpop.eup %2419 }
 0x736   :  { %v2422_v37 = vpop.eup %2421  ;;  %v758_v38 = vrot.slane %v2420_v36, 5 }
 0x737   :  { %v759_v41 = vrot.slane %v2422_v37, 4 }
 0x739   :  { %v760_v44 = vsel %vm235_vm2, %v759_v41, %v758_v38 }
 0x73a   :  { %v762_v46 = vsel %vm2797_vm5, %v754_v29, %v760_v44 }
 0x73b   :  { %765 = vrot.lane.b32.xlu1 %v762_v46, %s2626_s29  ;;  %v763_v59 = vmul.f32 %v762_v46, %v2868_v15 }
 0x7a3   :  { %v666_v48 = vpop.permute.xlu0 %665 }
 0x7a4   :  { %v668_v49 = vmul.f32 %v666_v48, %v662_v35 }
 0x7a6   :  { %670 = vrot.lane.b32.xlu0 %v668_v49, %s2627_s30 }
 0x7ad   :  { %v766_v51 = vpop.permute.xlu1 %765 }
 0x7ae   :  { %v768_v52 = vmul.f32 %v766_v51, %v762_v46 }
 0x7b0   :  { %770 = vrot.lane.b32.xlu1 %v768_v52, %s2627_s30 }
 0x818   :  { %v671_v56 = vpop.permute.xlu0 %670 }
 0x819   :  { %v2924_v57 = vadd.f32 %v671_v56, %v663_v53 }
 0x81b   :  { %2423 = vtanh.f32 %v2924_v57 }
 0x822   :  { %v771_v60 = vpop.permute.xlu1 %770 }
 0x823   :  { %v2928_v61 = vadd.f32 %v771_v60, %v763_v59 }
 0x825   :  { %v2424_v62 = vpop.eup %2423  ;;  %2425 = vtanh.f32 %v2928_v61 }
 0x826   :  { %676 = vrot.lane.b32.xlu0 %v2424_v62, %s2626_s29 }
 0x82f   :  { %v2426_v63 = vpop.eup %2425 }
 0x830   :  { %776 = vrot.lane.b32.xlu1 %v2426_v63, %s2626_s29 }
 0x898   :  { %v677_v0 = vpop.permute.xlu0 %676 }
 0x899   :  { %v679_v11 = vmul.f32 %v677_v0, %v662_v35 }
 0x89b   :  { %2427 = vtanh.f32 %v679_v11  ;;  %v784_v1 = vpack.c.bf16 %v679_v11, %v679_v11 }
 0x89d   :  { %786 = vrot.lane.b32.xlu0 %v784_v1, %s2627_s30 }
 0x8a2   :  { %v777_v2 = vpop.permute.xlu1 %776 }
 0x8a3   :  { %v779_v5 = vmul.f32 %v777_v2, %v762_v46 }
 0x8a5   :  { %v2428_v15 = vpop.eup %2427  ;;  %2429 = vtanh.f32 %v779_v5  ;;  %v884_v6 = vpack.c.bf16 %v779_v5, %v779_v5 }
 0x8a6   :  { %v2937_v8 = vmax.f32 %v577_v26, %v2428_v15 }
 0x8a7   :  { %886 = vrot.lane.b32.xlu1 %v884_v6, %s2627_s30 }
 0x8af   :  { %v2430_v9 = vpop.eup %2429 }
 0x8b0   :  { %v2943_v10 = vmax.f32 %v579_v28, %v2430_v9 }
 0x90f   :  { %v787_v12 = vpop.permute.xlu0 %786 }
 0x910   :  { %2208 = vmatmul.mubr.msk.bf16.vlgmr.msra.gmra.mrb[12].mxu1 %vm154_vm6, %v787_v12 }
 0x911   :  { %2220 = vmatpush3.bf16.msra.mxu1 %v2708_v3  ;;  %2223 = vmatprep.mubr.msk.bf16.mxu1 %vm2625_vm0, %v2624_v4 }
 0x912   :  { %2221 = vmatprep.subr.bf16.mxu1 %v2624_v4 }
 0x915   :  { %2222 = vmatpush3.bf16.msra.mxu1 %v2722_v7 }
 0x916   :  { %2235 = vmatprep.subr.bf16.mxu1 %v2624_v4 }
 0x919   :  { %v887_v22 = vpop.permute.xlu1 %886 }
 0x91a   :  { %2216 = vmatmul.mubr.msk.bf16.vlgmr.msra.gmra.mrb[16].mxu0 %vm154_vm6, %v887_v22 }
 0x91b   :  { %2228 = vmatpush3.bf16.msra.mxu0 %v2744_v14  ;;  %2231 = vmatprep.mubr.msk.bf16.mxu0 %vm2625_vm0, %v2624_v4 }
 0x91c   :  { %2229 = vmatprep.subr.bf16.mxu0 %v2624_v4 }
 0x91f   :  { %2230 = vmatpush3.bf16.msra.mxu0 %v2751_v16 }
 0x920   :  { %2243 = vmatprep.subr.bf16.mxu0 %v2624_v4 }
 0x9e3   :  { %v825_v3 = vpop.f32.mrb[12].mxu1 }
 0x9e4   :  { %v832_v23 = vrot.slane %v825_v3, 5  ;;  %v833_v26 = vrot.slane %v825_v3, 6  ;;  %v2209_v7 = vpop.f32.mrb[13].mxu1 }
 0x9e5   :  { %v828_v55 = vpop.f32.mrb[14].mxu1 }
 0x9e6   :  { %v836_v27 = vadd.f32 %v832_v23, %v2769_v39  ;;  %v837_v28 = vadd.f32 %v833_v26, %v2779_v43  ;;  %v2210_v13 = vpop.f32.mrb[15].mxu1 }
 0x9e8   :  { %v838_v17 = vadd.f32 %v2774_v40, %v836_v27  ;;  %v839_v18 = vadd.f32 %v2774_v40, %v837_v28 }
 0x9ea   :  { %2431 = vtanh.f32 %v838_v17  ;;  %v2056_v19 = vmul.f32 -1.442695, %v838_v17  ;;  %v2057_v47 = vmul.f32 -1.442695, %v839_v18 }
 0x9eb   :  { %2433 = vtanh.f32 %v839_v18 }
 0x9ec   :  { %2435 = vpow2.f32 %v2056_v19 }
 0x9ed   :  { %2437 = vpow2.f32 %v2057_v47  ;;  %v925_v20 = vpop.f32.mrb[16].mxu0 }
 0x9ee   :  { %v932_v50 = vrot.slane %v925_v20, 4  ;;  %v933_v21 = vrot.slane %v925_v20, 5  ;;  %v2217_v25 = vpop.f32.mrb[17].mxu0 }
 0x9ef   :  { %v928_v29 = vpop.f32.mrb[18].mxu0 }
 0x9f0   :  { %v936_v58 = vadd.f32 %v932_v50, %v2777_v42  ;;  %v937_v30 = vadd.f32 %v933_v21, %v2782_v45  ;;  %v2218_v31 = vpop.f32.mrb[19].mxu0 }
 0x9f2   :  { %v938_v32 = vadd.f32 %v2789_v54, %v936_v58  ;;  %v939_v34 = vadd.f32 %v2789_v54, %v937_v30 }
 0x9f4   :  { %v2432_v35 = vpop.eup %2431  ;;  %2439 = vtanh.f32 %v938_v32  ;;  %v2059_v36 = vmul.f32 -1.442695, %v938_v32  ;;  %v2060_v37 = vmul.f32 -1.442695, %v939_v34 }
 0x9f5   :  { %v2434_v38 = vpop.eup %2433  ;;  %2441 = vtanh.f32 %v939_v34  ;;  %v856_v41 = vrot.slane %v2432_v35, 3 }
 0x9f6   :  { %v2436_v44 = vpop.eup %2435  ;;  %2443 = vpow2.f32 %v2059_v36  ;;  %v857_v46 = vrot.slane %v2434_v38, 2 }
 0x9f7   :  { %v2438_v48 = vpop.eup %2437  ;;  %v848_v49 = vadd.f32 1.0, %v2436_v44  ;;  %2445 = vpow2.f32 %v2060_v37  ;;  %v3012_v44 = vld [vmem:[%s3285_s3 + $0x8] sm:$0xff]  }
 0x9f8   :  { %v849_v51 = vadd.f32 1.0, %v2438_v48  ;;  %v858_v52 = vsel %vm235_vm2, %v857_v46, %v856_v41  ;;  %v3003_v41 = vld [vmem:[%s3285_s3] sm:$0xff]  }
 0x9f9   :  { %2447 = vrcp.f32 %v848_v49 }
 0x9fa   :  { %2449 = vrcp.f32 %v849_v51 }
 0x9fe   :  { %v2440_v53 = vpop.eup %2439 }
 0x9ff   :  { %v2442_v56 = vpop.eup %2441  ;;  %v956_v59 = vrot.slane %v2440_v53, 4 }
 0xa00   :  { %v2444_v60 = vpop.eup %2443  ;;  %v957_v62 = vrot.slane %v2442_v56, 3 }
 0xa01   :  { %v2446_v63 = vpop.eup %2445  ;;  %v948_v0 = vadd.f32 1.0, %v2444_v60 }
 0xa02   :  { %v949_v11 = vadd.f32 1.0, %v2446_v63  ;;  %v958_v1 = vsel %vm235_vm2, %v957_v62, %v956_v59 }
 0xa03   :  { %v2448_v2 = vpop.eup %2447  ;;  %2451 = vrcp.f32 %v948_v0 }
 0xa04   :  { %v2450_v5 = vpop.eup %2449  ;;  %2453 = vrcp.f32 %v949_v11  ;;  %v862_v15 = vrot.slane %v2448_v2, 3 }
 0xa05   :  { %v863_v6 = vrot.slane %v2450_v5, 2 }
 0xa07   :  { %v864_v9 = vsel %vm235_vm2, %v863_v6, %v862_v15 }
 0xa08   :  { %v866_v12 = vsel %vm2797_vm5, %v858_v52, %v864_v9 }
 0xa09   :  { %869 = vrot.lane.b32.xlu0 %v866_v12, %s2626_s29  ;;  %v867_v18 = vmul.f32 %v866_v12, %v2924_v57 }
 0xa0d   :  { %v2452_v22 = vpop.eup %2451 }
 0xa0e   :  { %v2454_v3 = vpop.eup %2453  ;;  %v962_v23 = vrot.slane %v2452_v22, 4 }
 0xa0f   :  { %v963_v26 = vrot.slane %v2454_v3, 3 }
 0xa11   :  { %v964_v7 = vsel %vm235_vm2, %v963_v26, %v962_v23 }
 0xa12   :  { %v966_v55 = vsel %vm2797_vm5, %v958_v1, %v964_v7 }
 0xa13   :  { %969 = vrot.lane.b32.xlu1 %v966_v55, %s2626_s29  ;;  %v967_v20 = vmul.f32 %v966_v55, %v2928_v61 }
 0xa7b   :  { %v870_v27 = vpop.permute.xlu0 %869 }
 0xa7c   :  { %v872_v28 = vmul.f32 %v870_v27, %v866_v12 }
 0xa7e   :  { %874 = vrot.lane.b32.xlu0 %v872_v28, %s2627_s30 }
 0xa85   :  { %v970_v13 = vpop.permute.xlu1 %969 }
 0xa86   :  { %v972_v17 = vmul.f32 %v970_v13, %v966_v55 }
 0xa88   :  { %974 = vrot.lane.b32.xlu1 %v972_v17, %s2627_s30 }
 0xaf0   :  { %v875_v19 = vpop.permute.xlu0 %874 }
 0xaf1   :  { %v2980_v47 = vadd.f32 %v875_v19, %v867_v18 }
 0xaf3   :  { %2455 = vtanh.f32 %v2980_v47 }
 0xafa   :  { %v975_v50 = vpop.permute.xlu1 %974 }
 0xafb   :  { %v2984_v21 = vadd.f32 %v975_v50, %v967_v20 }
 0xafd   :  { %v2456_v25 = vpop.eup %2455  ;;  %2457 = vtanh.f32 %v2984_v21 }
 0xafe   :  { %880 = vrot.lane.b32.xlu0 %v2456_v25, %s2626_s29 }
 0xb07   :  { %v2458_v29 = vpop.eup %2457 }
 0xb08   :  { %980 = vrot.lane.b32.xlu1 %v2458_v29, %s2626_s29 }
 0xb70   :  { %v881_v58 = vpop.permute.xlu0 %880 }
 0xb71   :  { %v883_v57 = vmul.f32 %v881_v58, %v866_v12 }
 0xb73   :  { %2459 = vtanh.f32 %v883_v57  ;;  %v988_v30 = vpack.c.bf16 %v883_v57, %v883_v57 }
 0xb75   :  { %990 = vrot.lane.b32.xlu0 %v988_v30, %s2627_s30 }
 0xb7a   :  { %v981_v31 = vpop.permute.xlu1 %980 }
 0xb7b   :  { %v983_v32 = vmul.f32 %v981_v31, %v966_v55 }
 0xb7d   :  { %v2990_v61 = vpop.eup %2459  ;;  %2461 = vtanh.f32 %v983_v32  ;;  %v1088_v34 = vpack.c.bf16 %v983_v32, %v983_v32 }
 0xb7e   :  { %v985_v35 = vmax.f32 %v2937_v8, %v2990_v61  ;;  %v3085_v61 = vld [vmem:[%s3286_s4 + $0x8] sm:$0xff]  }
 0xb7f   :  { %1090 = vrot.lane.b32.xlu1 %v1088_v34, %s2627_s30 }
 0xb87   :  { %v2995_v36 = vpop.eup %2461 }
 0xb88   :  { %v987_v37 = vmax.f32 %v2943_v10, %v2995_v36  ;;  %v3076_v10 = vld [vmem:[%s3286_s4] sm:$0xff]  }
 0xbe7   :  { %v991_v38 = vpop.permute.xlu0 %990 }
 0xbe8   :  { %2224 = vmatmul.mubr.msk.bf16.vlgmr.msra.gmra.mrb[16].mxu1 %vm154_vm6, %v991_v38 }
 0xbe9   :  { %2236 = vmatpush3.bf16.msra.mxu1 %v3003_v41  ;;  %2239 = vmatprep.mubr.msk.bf16.mxu1 %vm2625_vm0, %v2624_v4 }
 0xbea   :  { %2237 = vmatprep.subr.bf16.mxu1 %v2624_v4 }
 0xbed   :  { %2238 = vmatpush3.bf16.msra.mxu1 %v3012_v44 }
 0xbee   :  { %2251 = vmatprep.subr.bf16.mxu1 %v2624_v4 }
 0xbf1   :  { %v1091_v46 = vpop.permute.xlu1 %1090 }
 0xbf2   :  { %2232 = vmatmul.mubr.msk.bf16.vlgmr.msra.gmra.mrb[20].mxu0 %vm154_vm6, %v1091_v46 }
 0xbf3   :  { %2244 = vmatpush3.bf16.msra.mxu0 %v2744_v14  ;;  %2247 = vmatprep.mubr.msk.bf16.mxu0 %vm2625_vm0, %v2624_v4 }
 0xbf4   :  { %2245 = vmatprep.subr.bf16.mxu0 %v2624_v4 }
 0xbf7   :  { %2246 = vmatpush3.bf16.msra.mxu0 %v2751_v16 }
 0xbf8   :  { %2259 = vmatprep.subr.bf16.mxu0 %v2624_v4 }
 0xcbb   :  { %v1029_v48 = vpop.f32.mrb[16].mxu1 }
 0xcbc   :  { %v1036_v49 = vrot.slane %v1029_v48, 4  ;;  %v1037_v51 = vrot.slane %v1029_v48, 5  ;;  %v2225_v52 = vpop.f32.mrb[17].mxu1 }
 0xcbd   :  { %v1032_v53 = vpop.f32.mrb[18].mxu1 }
 0xcbe   :  { %v1040_v56 = vadd.f32 %v1036_v49, %v2769_v39  ;;  %v1041_v59 = vadd.f32 %v1037_v51, %v2779_v43  ;;  %v2226_v60 = vpop.f32.mrb[19].mxu1 }
 0xcc0   :  { %v1042_v14 = vadd.f32 %v2774_v40, %v1040_v56  ;;  %v1043_v62 = vadd.f32 %v2774_v40, %v1041_v59 }
 0xcc2   :  { %2463 = vtanh.f32 %v1042_v14  ;;  %v2062_v63 = vmul.f32 -1.442695, %v1042_v14  ;;  %v2063_v0 = vmul.f32 -1.442695, %v1043_v62 }
 0xcc3   :  { %2465 = vtanh.f32 %v1043_v62 }
 0xcc4   :  { %2467 = vpow2.f32 %v2062_v63 }
 0xcc5   :  { %2469 = vpow2.f32 %v2063_v0  ;;  %v1129_v16 = vpop.f32.mrb[20].mxu0 }
 0xcc6   :  { %v1136_v11 = vrot.slane %v1129_v16, 5  ;;  %v1137_v1 = vrot.slane %v1129_v16, 6  ;;  %v2233_v2 = vpop.f32.mrb[21].mxu0 }
 0xcc7   :  { %v1132_v5 = vpop.f32.mrb[22].mxu0 }
 0xcc8   :  { %v1140_v15 = vadd.f32 %v1136_v11, %v2777_v42  ;;  %v1141_v6 = vadd.f32 %v1137_v1, %v2782_v45  ;;  %v2234_v9 = vpop.f32.mrb[23].mxu0 }
 0xcca   :  { %v1142_v12 = vadd.f32 %v2789_v54, %v1140_v15  ;;  %v1143_v40 = vadd.f32 %v2789_v54, %v1141_v6 }
 0xccc   :  { %v2464_v22 = vpop.eup %2463  ;;  %2471 = vtanh.f32 %v1142_v12  ;;  %v2065_v3 = vmul.f32 -1.442695, %v1142_v12  ;;  %v2066_v23 = vmul.f32 -1.442695, %v1143_v40 }
 0xccd   :  { %v2466_v26 = vpop.eup %2465  ;;  %2473 = vtanh.f32 %v1143_v40  ;;  %v1060_v7 = vrot.slane %v2464_v22, 4 }
 0xcce   :  { %v2468_v55 = vpop.eup %2467  ;;  %2475 = vpow2.f32 %v2065_v3  ;;  %v1061_v27 = vrot.slane %v2466_v26, 3 }
 0xccf   :  { %v2470_v28 = vpop.eup %2469  ;;  %v1052_v13 = vadd.f32 1.0, %v2468_v55  ;;  %2477 = vpow2.f32 %v2066_v23 }
 0xcd0   :  { %v1053_v17 = vadd.f32 1.0, %v2470_v28  ;;  %v1062_v18 = vsel %vm235_vm2, %v1061_v27, %v1060_v7 }
 0xcd1   :  { %2479 = vrcp.f32 %v1052_v13 }
 0xcd2   :  { %2481 = vrcp.f32 %v1053_v17 }
 0xcd6   :  { %v2472_v19 = vpop.eup %2471 }
 0xcd7   :  { %v2474_v54 = vpop.eup %2473  ;;  %v1160_v20 = vrot.slane %v2472_v19, 3  ;;  %v3094_v19 = vld [vmem:[%s3287_s5] ss:$0 sm:$0xff] }
 0xcd8   :  { %v2476_v50 = vpop.eup %2475  ;;  %v1161_v25 = vrot.slane %v2474_v54, 2 }
 0xcd9   :  { %v2478_v29 = vpop.eup %2477  ;;  %v1152_v58 = vadd.f32 1.0, %v2476_v50 }
 0xcda   :  { %v1153_v57 = vadd.f32 1.0, %v2478_v29  ;;  %v1162_v30 = vsel %vm235_vm2, %v1161_v25, %v1160_v20 }
 0xcdb   :  { %v2480_v31 = vpop.eup %2479  ;;  %2483 = vrcp.f32 %v1152_v58 }
 0xcdc   :  { %v2482_v32 = vpop.eup %2481  ;;  %2485 = vrcp.f32 %v1153_v57  ;;  %v1066_v34 = vrot.slane %v2480_v31, 4 }
 0xcdd   :  { %v1067_v38 = vrot.slane %v2482_v32, 3 }
 0xcdf   :  { %v1068_v46 = vsel %vm235_vm2, %v1067_v38, %v1066_v34 }
 0xce0   :  { %v1070_v48 = vsel %vm2797_vm5, %v1062_v18, %v1068_v46  ;;  %v3103_v46 = vld [vmem:[%s3288_s6] ss:$0 sm:$0xff] }
 0xce1   :  { %1073 = vrot.lane.b32.xlu0 %v1070_v48, %s2626_s29  ;;  %v1071_v0 = vmul.f32 %v1070_v48, %v2980_v47 }
 0xce5   :  { %v2484_v49 = vpop.eup %2483 }
 0xce6   :  { %v2486_v51 = vpop.eup %2485  ;;  %v1166_v52 = vrot.slane %v2484_v49, 3 }
 0xce7   :  { %v1167_v53 = vrot.slane %v2486_v51, 2 }
 0xce9   :  { %v1168_v56 = vsel %vm235_vm2, %v1167_v53, %v1166_v52 }
 0xcea   :  { %v1170_v59 = vsel %vm2797_vm5, %v1162_v30, %v1168_v56 }
 0xceb   :  { %1173 = vrot.lane.b32.xlu1 %v1170_v59, %s2626_s29  ;;  %v1171_v1 = vmul.f32 %v1170_v59, %v2984_v21 }
 0xd53   :  { %v1074_v60 = vpop.permute.xlu0 %1073 }
 0xd54   :  { %v1076_v14 = vmul.f32 %v1074_v60, %v1070_v48 }
 0xd56   :  { %1078 = vrot.lane.b32.xlu0 %v1076_v14, %s2627_s30 }
 0xd5d   :  { %v1174_v62 = vpop.permute.xlu1 %1173 }
 0xd5e   :  { %v1176_v63 = vmul.f32 %v1174_v62, %v1170_v59 }
 0xd60   :  { %1178 = vrot.lane.b32.xlu1 %v1176_v63, %s2627_s30 }
 0xdc8   :  { %v1079_v16 = vpop.permute.xlu0 %1078 }
 0xdc9   :  { %v3044_v11 = vadd.f32 %v1079_v16, %v1071_v0 }
 0xdcb   :  { %2487 = vtanh.f32 %v3044_v11 }
 0xdd2   :  { %v1179_v2 = vpop.permute.xlu1 %1178 }
 0xdd3   :  { %v3048_v5 = vadd.f32 %v1179_v2, %v1171_v1 }
 0xdd5   :  { %v2488_v15 = vpop.eup %2487  ;;  %2489 = vtanh.f32 %v3048_v5 }
 0xdd6   :  { %1084 = vrot.lane.b32.xlu0 %v2488_v15, %s2626_s29 }
 0xddf   :  { %v2490_v6 = vpop.eup %2489 }
 0xde0   :  { %1184 = vrot.lane.b32.xlu1 %v2490_v6, %s2626_s29 }
 0xe48   :  { %v1085_v9 = vpop.permute.xlu0 %1084 }
 0xe49   :  { %v1087_v47 = vmul.f32 %v1085_v9, %v1070_v48 }
 0xe4b   :  { %2491 = vtanh.f32 %v1087_v47  ;;  %v1192_v12 = vpack.c.bf16 %v1087_v47, %v1087_v47 }
 0xe4d   :  { %1194 = vrot.lane.b32.xlu0 %v1192_v12, %s2627_s30 }
 0xe52   :  { %v1185_v40 = vpop.permute.xlu1 %1184 }
 0xe53   :  { %v1187_v22 = vmul.f32 %v1185_v40, %v1170_v59 }
 0xe55   :  { %v2492_v21 = vpop.eup %2491  ;;  %2493 = vtanh.f32 %v1187_v22  ;;  %v1292_v3 = vpack.c.bf16 %v1187_v22, %v1187_v22 }
 0xe56   :  { %v3057_v23 = vmax.f32 %v985_v35, %v2492_v21 }
 0xe57   :  { %1294 = vrot.lane.b32.xlu1 %v1292_v3, %s2627_s30 }
 0xe5f   :  { %v2494_v26 = vpop.eup %2493 }
 0xe60   :  { %v3063_v7 = vmax.f32 %v987_v37, %v2494_v26 }
 0xebf   :  { %v1195_v55 = vpop.permute.xlu0 %1194 }
 0xec0   :  { %2240 = vmatmul.mubr.msk.bf16.vlgmr.msra.gmra.mrb[20].mxu1 %vm154_vm6, %v1195_v55 }
 0xec1   :  { %2252 = vmatpush3.bf16.msra.mxu1 %v3003_v41  ;;  %2255 = vmatprep.mubr.msk.bf16.mxu1 %vm2625_vm0, %v2624_v4 }
 0xec2   :  { %2253 = vmatprep.subr.bf16.mxu1 %v2624_v4 }
 0xec5   :  { %2254 = vmatpush3.bf16.msra.mxu1 %v3012_v44 }
 0xec6   :  { %2267 = vmatprep.subr.bf16.mxu1 %v2624_v4 }
 0xec9   :  { %v1295_v8 = vpop.permute.xlu1 %1294 }
 0xeca   :  { %2248 = vmatmul.mubr.msk.bf16.vlgmr.msra.gmra.mrb[24].mxu0 %vm154_vm6, %v1295_v8 }
 0xecb   :  { %2260 = vmatpush3.bf16.msra.mxu0 %v3076_v10  ;;  %2263 = vmatprep.mubr.msk.bf16.mxu0 %vm2625_vm0, %v2624_v4 }
 0xecc   :  { %2261 = vmatprep.subr.bf16.mxu0 %v2624_v4 }
 0xecf   :  { %2262 = vmatpush3.bf16.msra.mxu0 %v3085_v61 }
 0xed0   :  { %2275 = vmatprep.subr.bf16.mxu0 %v2624_v4 }
 0xf93   :  { %v1233_v35 = vpop.f32.mrb[20].mxu1 }
 0xf94   :  { %v1240_v36 = vrot.slane %v1233_v35, 3  ;;  %v1241_v37 = vrot.slane %v1233_v35, 4  ;;  %v2241_v27 = vpop.f32.mrb[21].mxu1 }
 0xf95   :  { %v1236_v28 = vpop.f32.mrb[22].mxu1 }
 0xf96   :  { %v1244_v13 = vadd.f32 %v1240_v36, %v2769_v39  ;;  %v1245_v17 = vadd.f32 %v1241_v37, %v2779_v43  ;;  %v2242_v18 = vpop.f32.mrb[23].mxu1 }
 0xf98   :  { %v1246_v54 = vadd.f32 %v3094_v19, %v1244_v13  ;;  %v1247_v20 = vadd.f32 %v3094_v19, %v1245_v17 }
 0xf9a   :  { %2495 = vtanh.f32 %v1246_v54  ;;  %v2068_v50 = vmul.f32 -1.442695, %v1246_v54  ;;  %v2069_v25 = vmul.f32 -1.442695, %v1247_v20 }
 0xf9b   :  { %2497 = vtanh.f32 %v1247_v20 }
 0xf9c   :  { %2499 = vpow2.f32 %v2068_v50 }
 0xf9d   :  { %2501 = vpow2.f32 %v2069_v25  ;;  %v1333_v29 = vpop.f32.mrb[24].mxu0 }
 0xf9e   :  { %v1340_v58 = vrot.slane %v1333_v29, 6  ;;  %v1341_v57 = vrot.slane %v1333_v29, 7  ;;  %v2249_v30 = vpop.f32.mrb[25].mxu0 }
 0xf9f   :  { %v1336_v31 = vpop.f32.mrb[26].mxu0 }
 0xfa0   :  { %v1344_v32 = vadd.f32 %v1340_v58, %v2777_v42  ;;  %v1345_v34 = vadd.f32 %v1341_v57, %v2782_v45  ;;  %v2250_v38 = vpop.f32.mrb[27].mxu0 }
 0xfa2   :  { %v1346_v48 = vadd.f32 %v3103_v46, %v1344_v32  ;;  %v1347_v49 = vadd.f32 %v3103_v46, %v1345_v34 }
 0xfa4   :  { %v2496_v51 = vpop.eup %2495  ;;  %2503 = vtanh.f32 %v1346_v48  ;;  %v2071_v52 = vmul.f32 -1.442695, %v1346_v48  ;;  %v2072_v53 = vmul.f32 -1.442695, %v1347_v49 }
 0xfa5   :  { %v2498_v56 = vpop.eup %2497  ;;  %2505 = vtanh.f32 %v1347_v49  ;;  %v1264_v59 = vrot.slane %v2496_v51, 5 }
 0xfa6   :  { %v2500_v60 = vpop.eup %2499  ;;  %2507 = vpow2.f32 %v2071_v52  ;;  %v1265_v14 = vrot.slane %v2498_v56, 4 }
 0xfa7   :  { %v2502_v62 = vpop.eup %2501  ;;  %v1256_v63 = vadd.f32 1.0, %v2500_v60  ;;  %2509 = vpow2.f32 %v2072_v53 }
 0xfa8   :  { %v1257_v0 = vadd.f32 1.0, %v2502_v62  ;;  %v1266_v16 = vsel %vm235_vm2, %v1265_v14, %v1264_v59 }
 0xfa9   :  { %2511 = vrcp.f32 %v1256_v63 }
 0xfaa   :  { %2513 = vrcp.f32 %v1257_v0 }
 0xfae   :  { %v2504_v1 = vpop.eup %2503 }
 0xfaf   :  { %v2506_v2 = vpop.eup %2505  ;;  %v1364_v15 = vrot.slane %v2504_v1, 2 }
 0xfb0   :  { %v2508_v6 = vpop.eup %2507  ;;  %v1365_v9 = vrot.slane %v2506_v2, 1 }
 0xfb1   :  { %v2510_v47 = vpop.eup %2509  ;;  %v1356_v12 = vadd.f32 1.0, %v2508_v6 }
 0xfb2   :  { %v1357_v40 = vadd.f32 1.0, %v2510_v47  ;;  %v1366_v22 = vsel %vm235_vm2, %v1365_v9, %v1364_v15 }
 0xfb3   :  { %v2512_v21 = vpop.eup %2511  ;;  %2515 = vrcp.f32 %v1356_v12 }
 0xfb4   :  { %v2514_v3 = vpop.eup %2513  ;;  %2517 = vrcp.f32 %v1357_v40  ;;  %v1270_v26 = vrot.slane %v2512_v21, 5 }
 0xfb5   :  { %v1271_v55 = vrot.slane %v2514_v3, 4 }
 0xfb7   :  { %v1272_v8 = vsel %vm235_vm2, %v1271_v55, %v1270_v26 }
 0xfb8   :  { %v1274_v35 = vsel %vm2797_vm5, %v1266_v16, %v1272_v8 }
 0xfb9   :  { %1277 = vrot.lane.b32.xlu0 %v1274_v35, %s2626_s29  ;;  %v1275_v25 = vmul.f32 %v1274_v35, %v3044_v11 }
 0xfbd   :  { %v2516_v36 = vpop.eup %2515 }
 0xfbe   :  { %v2518_v37 = vpop.eup %2517  ;;  %v1370_v27 = vrot.slane %v2516_v36, 2 }
 0xfbf   :  { %v1371_v28 = vrot.slane %v2518_v37, 1 }
 0xfc1   :  { %v1372_v13 = vsel %vm235_vm2, %v1371_v28, %v1370_v27 }
 0xfc2   :  { %v1374_v17 = vsel %vm2797_vm5, %v1366_v22, %v1372_v13 }
 0xfc3   :  { %1377 = vrot.lane.b32.xlu1 %v1374_v17, %s2626_s29  ;;  %v1375_v57 = vmul.f32 %v1374_v17, %v3048_v5 }
0x102b   :  { %v1278_v18 = vpop.permute.xlu0 %1277 }
0x102c   :  { %v1280_v54 = vmul.f32 %v1278_v18, %v1274_v35 }
0x102e   :  { %1282 = vrot.lane.b32.xlu0 %v1280_v54, %s2627_s30 }
0x1035   :  { %v1378_v20 = vpop.permute.xlu1 %1377 }
0x1036   :  { %v1380_v50 = vmul.f32 %v1378_v20, %v1374_v17 }
0x1038   :  { %1382 = vrot.lane.b32.xlu1 %v1380_v50, %s2627_s30 }
0x10a0   :  { %v1283_v29 = vpop.permute.xlu0 %1282 }
0x10a1   :  { %v3120_v58 = vadd.f32 %v1283_v29, %v1275_v25 }
0x10a3   :  { %2519 = vtanh.f32 %v3120_v58 }
0x10aa   :  { %v1383_v30 = vpop.permute.xlu1 %1382 }
0x10ab   :  { %v3124_v31 = vadd.f32 %v1383_v30, %v1375_v57 }
0x10ad   :  { %v2520_v32 = vpop.eup %2519  ;;  %2521 = vtanh.f32 %v3124_v31 }
0x10ae   :  { %1288 = vrot.lane.b32.xlu0 %v2520_v32, %s2626_s29 }
0x10b7   :  { %v2522_v34 = vpop.eup %2521 }
0x10b8   :  { %1388 = vrot.lane.b32.xlu1 %v2522_v34, %s2626_s29 }
0x1120   :  { %v1289_v38 = vpop.permute.xlu0 %1288 }
0x1121   :  { %v1291_v11 = vmul.f32 %v1289_v38, %v1274_v35 }
0x1123   :  { %2523 = vtanh.f32 %v1291_v11  ;;  %v1396_v48 = vpack.c.bf16 %v1291_v11, %v1291_v11 }
0x1125   :  { %1398 = vrot.lane.b32.xlu0 %v1396_v48, %s2627_s30 }
0x112a   :  { %v1389_v49 = vpop.permute.xlu1 %1388 }
0x112b   :  { %v1391_v51 = vmul.f32 %v1389_v49, %v1374_v17 }
0x112d   :  { %v3130_v5 = vpop.eup %2523  ;;  %2525 = vtanh.f32 %v1391_v51  ;;  %v1496_v52 = vpack.c.bf16 %v1391_v51, %v1391_v51 }
0x112e   :  { %v1393_v53 = vmax.f32 %v3057_v23, %v3130_v5 }
0x112f   :  { %1498 = vrot.lane.b32.xlu1 %v1496_v52, %s2627_s30 }
0x1137   :  { %v3135_v56 = vpop.eup %2525 }
0x1138   :  { %v1395_v59 = vmax.f32 %v3063_v7, %v3135_v56 }
0x1197   :  { %v1399_v60 = vpop.permute.xlu0 %1398 }
0x1198   :  { %2256 = vmatmul.mubr.msk.bf16.vlgmr.msra.gmra.mrb[24].mxu1 %vm154_vm6, %v1399_v60 }
0x1199   :  { %2268 = vmatpush3.bf16.msra.mxu1 %v3003_v41  ;;  %2271 = vmatprep.mubr.msk.bf16.mxu1 %vm2625_vm0, %v2624_v4 }
0x119a   :  { %2269 = vmatprep.subr.bf16.mxu1 %v2624_v4 }
0x119d   :  { %2270 = vmatpush3.bf16.msra.mxu1 %v3012_v44 }
0x119e   :  { %2283 = vmatprep.subr.bf16.mxu1 %v2624_v4 }
0x11a1   :  { %v1499_v14 = vpop.permute.xlu1 %1498 }
0x11a2   :  { %2264 = vmatmul.mubr.msk.bf16.vlgmr.msra.gmra.mrb[28].mxu0 %vm154_vm6, %v1499_v14 }
0x11a3   :  { %2276 = vmatpush3.bf16.msra.mxu0 %v3076_v10  ;;  %2279 = vmatprep.mubr.msk.bf16.mxu0 %vm2625_vm0, %v2624_v4 }
0x11a4   :  { %2277 = vmatprep.subr.bf16.mxu0 %v2624_v4 }
0x11a7   :  { %2278 = vmatpush3.bf16.msra.mxu0 %v3085_v61 }
0x11a8   :  { %2297 = vmatprep.subr.bf16.mxu0 %v2624_v4 }
0x126b   :  { %v1437_v41 = vpop.f32.mrb[24].mxu1 }
0x126c   :  { %v1444_v62 = vrot.slane %v1437_v41, 2  ;;  %v1445_v63 = vrot.slane %v1437_v41, 3  ;;  %v2257_v44 = vpop.f32.mrb[25].mxu1 }
0x126d   :  { %v1440_v0 = vpop.f32.mrb[26].mxu1 }
0x126e   :  { %v1448_v16 = vadd.f32 %v1444_v62, %v2769_v39  ;;  %v1449_v1 = vadd.f32 %v1445_v63, %v2779_v43  ;;  %v2258_v2 = vpop.f32.mrb[27].mxu1 }
0x1270   :  { %v1450_v10 = vadd.f32 %v3094_v19, %v1448_v16  ;;  %v1451_v15 = vadd.f32 %v3094_v19, %v1449_v1 }
0x1272   :  { %2527 = vtanh.f32 %v1450_v10  ;;  %v2074_v6 = vmul.f32 -1.442695, %v1450_v10  ;;  %v2075_v9 = vmul.f32 -1.442695, %v1451_v15 }
0x1273   :  { %2529 = vtanh.f32 %v1451_v15 }
0x1274   :  { %2531 = vpow2.f32 %v2074_v6 }
0x1275   :  { %2533 = vpow2.f32 %v2075_v9  ;;  %v1537_v61 = vpop.f32.mrb[28].mxu0 }
0x1276   :  { %v1544_v47 = vrot.slane %v1537_v61, 7  ;;  %v1548_v12 = vadd.f32 %v1537_v61, %v2782_v45  ;;  %v2265_v40 = vpop.f32.mrb[29].mxu0 }
0x1277   :  { %v1540_v22 = vpop.f32.mrb[30].mxu0 }
0x1278   :  { %v1547_v21 = vadd.f32 %v1544_v47, %v2777_v42  ;;  %v1550_v3 = vadd.f32 %v3103_v46, %v1548_v12  ;;  %v2266_v26 = vpop.f32.mrb[31].mxu0 }
0x127a   :  { %v1549_v55 = vadd.f32 %v3103_v46, %v1547_v21  ;;  %v2078_v8 = vmul.f32 -1.442695, %v1550_v3  ;;  %2535 = vtanh.f32 %v1550_v3 }
0x127c   :  { %v2528_v35 = vpop.eup %2527  ;;  %2537 = vtanh.f32 %v1549_v55  ;;  %v2077_v36 = vmul.f32 -1.442695, %v1549_v55 }
0x127d   :  { %v2530_v37 = vpop.eup %2529  ;;  %2539 = vpow2.f32 %v2078_v8  ;;  %v1468_v27 = vrot.slane %v2528_v35, 6 }
0x127e   :  { %v2532_v28 = vpop.eup %2531  ;;  %2541 = vpow2.f32 %v2077_v36  ;;  %v1469_v13 = vrot.slane %v2530_v37, 5 }
0x127f   :  { %v2534_v17 = vpop.eup %2533  ;;  %v1460_v18 = vadd.f32 1.0, %v2532_v28 }
0x1280   :  { %v1461_v54 = vadd.f32 1.0, %v2534_v17  ;;  %v1470_v20 = vsel %vm235_vm2, %v1469_v13, %v1468_v27 }
0x1281   :  { %2543 = vrcp.f32 %v1460_v18 }
0x1282   :  { %2545 = vrcp.f32 %v1461_v54 }
0x1284   :  { %v2536_v50 = vpop.eup %2535 }
0x1286   :  { %v2538_v25 = vpop.eup %2537 }
0x1287   :  { %v2540_v29 = vpop.eup %2539  ;;  %v1567_v57 = vrot.slane %v2538_v25, 1 }
0x1288   :  { %v2542_v30 = vpop.eup %2541  ;;  %v1560_v34 = vadd.f32 1.0, %v2540_v29 }
0x1289   :  { %v1559_v32 = vadd.f32 1.0, %v2542_v30  ;;  %v1568_v38 = vsel %vm235_vm2, %v2536_v50, %v1567_v57 }
0x128b   :  { %v2544_v11 = vpop.eup %2543  ;;  %2547 = vrcp.f32 %v1559_v32 }
0x128c   :  { %v2546_v48 = vpop.eup %2545  ;;  %v1474_v49 = vrot.slane %v2544_v11, 6  ;;  %2549 = vrcp.f32 %v1560_v34 }
0x128d   :  { %v1475_v51 = vrot.slane %v2546_v48, 5 }
0x128f   :  { %v1476_v52 = vsel %vm235_vm2, %v1475_v51, %v1474_v49 }
0x1290   :  { %v1478_v60 = vsel %vm2797_vm5, %v1470_v20, %v1476_v52 }
0x1291   :  { %1481 = vrot.lane.b32.xlu0 %v1478_v60, %s2626_s29  ;;  %v1479_v10 = vmul.f32 %v1478_v60, %v3120_v58 }
0x1295   :  { %v2548_v14 = vpop.eup %2547 }
0x1296   :  { %v1572_v41 = vrot.slane %v2548_v14, 1  ;;  %v2550_v62 = vpop.eup %2549 }
0x1298   :  { %v1573_v63 = vsel %vm235_vm2, %v2550_v62, %v1572_v41 }
0x1299   :  { %v1575_v44 = vsel %vm2797_vm5, %v1568_v38, %v1573_v63 }
0x129a   :  { %1578 = vrot.lane.b32.xlu1 %v1575_v44, %s2626_s29  ;;  %v1576_v9 = vmul.f32 %v1575_v44, %v3124_v31 }
0x1303   :  { %v1482_v0 = vpop.permute.xlu0 %1481 }
0x1304   :  { %v1484_v16 = vmul.f32 %v1482_v0, %v1478_v60 }
0x1306   :  { %1486 = vrot.lane.b32.xlu0 %v1484_v16, %s2627_s30 }
0x130c   :  { %v1579_v1 = vpop.permute.xlu1 %1578 }
0x130d   :  { %v1581_v2 = vmul.f32 %v1579_v1, %v1575_v44 }
0x130f   :  { %1583 = vrot.lane.b32.xlu1 %v1581_v2, %s2627_s30 }
0x1378   :  { %v1487_v15 = vpop.permute.xlu0 %1486 }
0x1379   :  { %v3174_v6 = vadd.f32 %v1487_v15, %v1479_v10 }
0x137b   :  { %2551 = vtanh.f32 %v3174_v6 }
0x1381   :  { %v1584_v61 = vpop.permute.xlu1 %1583 }
0x1382   :  { %v3178_v47 = vadd.f32 %v1584_v61, %v1576_v9 }
0x1384   :  { %2553 = vtanh.f32 %v3178_v47 }
0x1385   :  { %v2552_v12 = vpop.eup %2551 }
0x1386   :  { %1492 = vrot.lane.b32.xlu0 %v2552_v12, %s2626_s29 }
0x138e   :  { %v2554_v40 = vpop.eup %2553 }
0x138f   :  { %1589 = vrot.lane.b32.xlu1 %v2554_v40, %s2626_s29 }
0x13f8   :  { %v1493_v22 = vpop.permute.xlu0 %1492 }
0x13f9   :  { %v1495_v58 = vmul.f32 %v1493_v22, %v1478_v60 }
0x13fb   :  { %2555 = vtanh.f32 %v1495_v58  ;;  %v1597_v21 = vpack.c.bf16 %v1495_v58, %v1495_v58 }
0x13fd   :  { %1599 = vrot.lane.b32.xlu0 %v1597_v21, %s2627_s30 }
0x1401   :  { %v1590_v3 = vpop.permute.xlu1 %1589 }
0x1402   :  { %v1592_v26 = vmul.f32 %v1590_v3, %v1575_v44 }
0x1404   :  { %2557 = vtanh.f32 %v1592_v26  ;;  %v1697_v31 = vpack.c.bf16 %v1592_v26, %v1592_v26 }
0x1405   :  { %v2556_v55 = vpop.eup %2555 }
0x1406   :  { %1699 = vrot.lane.b32.xlu1 %v1697_v31, %s2627_s30  ;;  %v3188_v8 = vmax.f32 %v1393_v53, %v2556_v55 }
0x140e   :  { %v2558_v35 = vpop.eup %2557 }
0x140f   :  { %v3193_v36 = vmax.f32 %v1395_v59, %v2558_v35 }
0x146f   :  { %v1600_v37 = vpop.permute.xlu0 %1599 }
0x1470   :  { %2272 = vmatmul.mubr.msk.bf16.vlgmr.msra.gmra.mrb[28].mxu1 %vm154_vm6, %v1600_v37 }
0x1471   :  { %2293 = vmatprep.mubr.msk.bf16.mxu1 %vm2625_vm0, %v2624_v4 }
0x1478   :  { %v1700_v27 = vpop.permute.xlu1 %1699 }
0x1479   :  { %2280 = vmatmul.mubr.msk.bf16.vlgmr.msra.gmra.mrb[32].mxu0 %vm154_vm6, %v1700_v27 }
0x147a   :  { %2301 = vmatprep.mubr.msk.bf16.mxu0 %vm2625_vm0, %v2624_v4 }
0x1543   :  { %v1638_v23 = vpop.f32.mrb[28].mxu1 }
0x1544   :  { %v1645_v5 = vrot.slane %v1638_v23, 1  ;;  %v1646_v53 = vrot.slane %v1638_v23, 2  ;;  %v2273_v28 = vpop.f32.mrb[29].mxu1 }
0x1545   :  { %v1641_v13 = vpop.f32.mrb[30].mxu1 }
0x1546   :  { %v1649_v7 = vadd.f32 %v1645_v5, %v2769_v39  ;;  %v1650_v56 = vadd.f32 %v1646_v53, %v2779_v43  ;;  %v2274_v59 = vpop.f32.mrb[31].mxu1 }
0x1547   :  { %v2326_v59 = vld [vmem:[%s3289_s7 + $0x10] sm:$0xff]  }
0x1548   :  { %v1651_v17 = vadd.f32 %v3094_v19, %v1649_v7  ;;  %v1652_v18 = vadd.f32 %v3094_v19, %v1650_v56  ;;  %v2324_v7 = vld [vmem:[%s3289_s7] sm:$0xff]  }
0x1549   :  { %2284 = vmatpush3.bf16.msra.mxu1 %v2324_v7 }
0x154a   :  { %2559 = vtanh.f32 %v1651_v17  ;;  %v2080_v54 = vmul.f32 -1.442695, %v1651_v17  ;;  %v2081_v20 = vmul.f32 -1.442695, %v1652_v18  ;;  %2285 = vmatprep.subr.bf16.mxu1 %v2624_v4 }
0x154b   :  { %2561 = vtanh.f32 %v1652_v18  ;;  %v2327_v18 = vld [vmem:[%s3289_s7 + $0x18] sm:$0xff]  }
0x154c   :  { %2563 = vpow2.f32 %v2080_v54  ;;  %v1738_v50 = vpop.f32.mrb[32].mxu0 }
0x154d   :  { %2565 = vpow2.f32 %v2081_v20  ;;  %v1745_v25 = vrot.slane %v1738_v50, 1  ;;  %v1748_v29 = vadd.f32 %v1738_v50, %v2777_v42  ;;  %v2281_v57 = vpop.f32.mrb[33].mxu0 }
0x154e   :  { %v1741_v30 = vpop.f32.mrb[34].mxu0 }
0x154f   :  { %v1749_v39 = vadd.f32 %v1745_v25, %v2782_v45  ;;  %v1750_v43 = vadd.f32 %v3103_v46, %v1748_v29  ;;  %v2282_v32 = vpop.f32.mrb[35].mxu0  ;;  %v2328_v25 = vld [vmem:[%s3289_s7 + $0x20] sm:$0xff]  }
0x1551   :  { %v1751_v34 = vadd.f32 %v3103_v46, %v1749_v39  ;;  %v2083_v19 = vmul.f32 -1.442695, %v1750_v43  ;;  %2567 = vtanh.f32 %v1750_v43 }
0x1553   :  { %2569 = vtanh.f32 %v1751_v34  ;;  %v2084_v38 = vmul.f32 -1.442695, %v1751_v34 }
0x1554   :  { %v2560_v11 = vpop.eup %2559  ;;  %2571 = vpow2.f32 %v2083_v19 }
0x1555   :  { %v2562_v48 = vpop.eup %2561  ;;  %2573 = vpow2.f32 %v2084_v38  ;;  %v1669_v49 = vrot.slane %v2560_v11, 7  ;;  %v2329_v11 = vld [vmem:[%s3293_s11] sm:$0xff]  }
0x1556   :  { %v2564_v51 = vpop.eup %2563  ;;  %v1670_v42 = vrot.slane %v2562_v48, 6  ;;  %2298 = vmatpush3.bf16.msra.mxu0 %v2329_v11 }
0x1557   :  { %v2566_v52 = vpop.eup %2565  ;;  %v1661_v60 = vadd.f32 1.0, %v2564_v51  ;;  %2299 = vmatprep.subr.bf16.mxu0 %v2624_v4 }
0x1558   :  { %v1662_v14 = vadd.f32 1.0, %v2566_v52  ;;  %v1671_v45 = vsel %vm235_vm2, %v1670_v42, %v1669_v49 }
0x1559   :  { %2575 = vrcp.f32 %v1661_v60 }
0x155a   :  { %2577 = vrcp.f32 %v1662_v14 }
0x155b   :  { %v2568_v41 = vpop.eup %2567 }
0x155d   :  { %v2570_v46 = vpop.eup %2569 }
0x155e   :  { %v2572_v62 = vpop.eup %2571  ;;  %v1768_v63 = vrot.slane %v2570_v46, 7 }
0x155f   :  { %v2574_v44 = vpop.eup %2573  ;;  %v1760_v0 = vadd.f32 1.0, %v2572_v62 }
0x1560   :  { %v1761_v16 = vadd.f32 1.0, %v2574_v44  ;;  %v1769_v1 = vsel %vm235_vm2, %v1768_v63, %v2568_v41 }
0x1562   :  { %2579 = vrcp.f32 %v1761_v16 }
0x1563   :  { %v2576_v2 = vpop.eup %2575  ;;  %2581 = vrcp.f32 %v1760_v0 }
0x1564   :  { %v2578_v10 = vpop.eup %2577  ;;  %v1675_v15 = vrot.slane %v2576_v2, 7 }
0x1565   :  { %v1676_v9 = vrot.slane %v2578_v10, 6 }
0x1567   :  { %v1677_v61 = vsel %vm235_vm2, %v1676_v9, %v1675_v15 }
0x1568   :  { %v1679_v12 = vsel %vm2797_vm5, %v1671_v45, %v1677_v61 }
0x1569   :  { %1682 = vrot.lane.b32.xlu0 %v1679_v12, %s2626_s29  ;;  %v1680_v37 = vmul.f32 %v1679_v12, %v3174_v6 }
0x156c   :  { %v2580_v40 = vpop.eup %2579 }
0x156d   :  { %v1773_v22 = vrot.slane %v2580_v40, 7  ;;  %v2582_v58 = vpop.eup %2581 }
0x156f   :  { %v1774_v21 = vsel %vm235_vm2, %v1773_v22, %v2582_v58  ;;  %v2092_v58 = vld [vmem:[%s3291_s9] ss:$0 sm:$0xff]  ;;  %s2599_s9 = scalar_lea.vmem %s2023_s19, 32 }
0x1570   :  { %v1776_v3 = vsel %vm2797_vm5, %v1769_v1, %v1774_v21  ;;  %p2600_p0 = scmp.ne.s32.totalorder %s2023_s19, %s2599_s9  ;;  %p2605_p2 = scmp.lt.s32.totalorder %s2599_s9, %s2599_s9 }
0x1571   :  { %1779 = vrot.lane.b32.xlu1 %v1776_v3, %s2626_s29  ;;  %v1777_v5 = vmul.f32 %v1776_v3, %v3178_v47  ;;  %v2325_v47 = vld [vmem:[%s3289_s7 + $0x8] sm:$0xff]  }
0x1572   :  { %2286 = vmatpush3.bf16.msra.mxu1 %v2325_v47  ;;  %p2606_p3 = por %p2605_p2, %p2604_p1 }
0x1573   :  { %2287 = vmatprep.subr.bf16.mxu1 %v2624_v4 }
0x1574   :  { %p2607_p4 = pnand %p2606_p3, %p2600_p0 }
0x1576   :  { %2288 = vmatpush3.bf16.msra.mxu1 %v2326_v59 }
0x1577   :  { %2289 = vmatprep.subr.bf16.mxu1 %v2624_v4 }
0x157a   :  { %2290 = vmatpush3.bf16.msra.mxu1 %v2327_v18 }
0x157b   :  { %2291 = vmatprep.subr.bf16.mxu1 %v2624_v4 }
0x157e   :  { %2292 = vmatpush3.bf16.msra.mxu1 %v2328_v25 }
0x15db   :  { %v1683_v26 = vpop.permute.xlu0 %1682 }
0x15dc   :  { %v1685_v31 = vmul.f32 %v1683_v26, %v1679_v12 }
0x15de   :  { %1687 = vrot.lane.b32.xlu0 %v1685_v31, %s2627_s30 }
0x15e3   :  { %v1780_v55 = vpop.permute.xlu1 %1779 }
0x15e4   :  { %v1782_v35 = vmul.f32 %v1780_v55, %v1776_v3 }
0x15e6   :  { %1784 = vrot.lane.b32.xlu1 %v1782_v35, %s2627_s30 }
0x1650   :  { %v1688_v27 = vpop.permute.xlu0 %1687 }
0x1651   :  { %v1690_v23 = vadd.f32 %v1688_v27, %v1680_v37  ;;  %v2094_v37 = vld [vmem:[%s3294_s12] ss:$0 sm:$0xff] }
0x1653   :  { %2583 = vtanh.f32 %v1690_v23 }
0x1658   :  { %v1785_v53 = vpop.permute.xlu1 %1784 }
0x1659   :  { %v1787_v24 = vadd.f32 %v1785_v53, %v1777_v5 }
0x165b   :  { %2585 = vtanh.f32 %v1787_v24 }
0x165d   :  { %v2584_v28 = vpop.eup %2583 }
0x165e   :  { %1693 = vrot.lane.b32.xlu0 %v2584_v28, %s2626_s29 }
0x1665   :  { %v2586_v13 = vpop.eup %2585 }
0x1666   :  { %1790 = vrot.lane.b32.xlu1 %v2586_v13, %s2626_s29 }
0x16d0   :  { %v1694_v6 = vpop.permute.xlu0 %1693 }
0x16d1   :  { %v1696_v56 = vmul.f32 %v1694_v6, %v1679_v12 }
0x16d3   :  { %2587 = vtanh.f32 %v1696_v56 }
0x16d8   :  { %v1791_v17 = vpop.permute.xlu1 %1790 }
0x16d9   :  { %v1793_v54 = vmul.f32 %v1791_v17, %v1776_v3  ;;  %v2093_v3 = vld [vmem:[%s3292_s10] ss:$0 sm:$0xff] }
0x16db   :  { %2589 = vtanh.f32 %v1793_v54 }
0x16dd   :  { %v2588_v20 = vpop.eup %2587 }
0x16de   :  { %v1795_v50 = vmax.f32 %v3188_v8, %v2588_v20 }
0x16e0   :  { %1799 = vrot.lane.b32.xlu0 %v1795_v50, %s2627_s30 }
0x16e5   :  { %v2590_v29 = vpop.eup %2589 }
0x16e6   :  { %v1797_v57 = vmax.f32 %v3193_v36, %v2590_v29  ;;  %v2085_v36 = vld [vmem:[%s3290_s8] ss:$0 sm:$0xff] }
0x16e8   :  { %v2312_v30 = vpack.i.bf16 %v2767_v33, %v1797_v57  ;;  %v2330_v33 = vld [vmem:[%s3293_s11 + $0x8] sm:$0xff]  }
0x16e9   :  { %2300 = vmatpush3.bf16.msra.mxu0 %v2330_v33 }
0x16ea   :  { %2313 = vrot.lane.b32.xlu1 %v2312_v30, %s2626_s29 }
0x1752   :  { %v1800_v34 = vpop.permute.xlu0 %1799 }
0x175c   :  { %v2314_v39 = vpop.permute.xlu1 %2313 }
0x175d   :  { %v2316_v43 = vunpack.i.h.bf16 %v2314_v39  ;;  %v2315_v32 = vunpack.i.l.bf16 %v2314_v39 }
0x175f   :  { %v1812_v8 = vsel %vm154_vm6, %v1800_v34, %v2315_v32 }
0x1760   :  { %v1814_v19 = vsel %vm1813_vm7, %v1812_v8, %v2316_v43 }
0x1761   :  { %v1815_v38 = vpack.c.bf16 %v1814_v19, %v1814_v19 }
0x1763   :  { %2294 = vmatmul.mubr.msk.bf16.vlgmr.msra.gmra.mrb[32].mxu1 %vm1863_vm8, %v1815_v38 }
0x1836   :  { %v1901_v48 = vpop.f32.mrb[32].mxu1 }
0x1837   :  { %v1902_v49 = vadd.f32 %v2085_v36, %v1901_v48  ;;  %v2295_v51 = vpop.f32.mrb[33].mxu1 }
0x1838   :  { %v1904_v42 = vpop.f32.mrb[34].mxu1 }
0x1839   :  { %v1908_v52 = vsel %vm1907_vm9, %v1902_v49, 0.0  ;;  %v2296_v60 = vpop.f32.mrb[35].mxu1 }
0x183a   :  { %v1909_v14 = vrot.slane %v1908_v52, 4 }
0x183c   :  { %v1910_v45 = vadd.f32 %v1909_v14, %v1908_v52 }
0x183e   :  { %v1911_v41 = vrot.slane %v1910_v45, 2 }
0x1840   :  { %v1912_v4 = vadd.f32 %v1911_v41, %v1910_v45 }
0x1842   :  { %v1913_v46 = vrot.slane %v1912_v4, 1 }
0x1844   :  { %v1914_v62 = vadd.f32 %v1913_v46, %v1912_v4 }
0x1846   :  { %v1916_v63 = vmul.f32 0.5, %v1914_v62 }
0x1848   :  { %v1917_v44 = vsub.f32 %v1902_v49, %v1916_v63 }
0x184a   :  { %v1918_v0 = vmul.f32 %v1917_v44, %v1917_v44 }
0x184c   :  { %v1919_v16 = vsel %vm1907_vm9, %v1918_v0, 0.0 }
0x184d   :  { %v1920_v1 = vrot.slane %v1919_v16, 4 }
0x184f   :  { %v1921_v2 = vadd.f32 %v1920_v1, %v1919_v16 }
0x1851   :  { %v1922_v10 = vrot.slane %v1921_v2, 2 }
0x1853   :  { %v1923_v15 = vadd.f32 %v1922_v10, %v1921_v2 }
0x1855   :  { %v1924_v9 = vrot.slane %v1923_v15, 1 }
0x1857   :  { %v1925_v61 = vadd.f32 %v1924_v9, %v1923_v15 }
0x1859   :  { %v1926_v12 = vmul.f32 0.5, %v1925_v61 }
0x185b   :  { %v1927_v40 = vadd.f32 1e-05, %v1926_v12 }
0x185d   :  { %2591 = vrsqrt.f32 %v1927_v40 }
0x1867   :  { %v2592_v22 = vpop.eup %2591 }
0x1868   :  { %v1929_v21 = vmul.f32 %v2592_v22, %v1917_v44 }
0x186a   :  { %v1937_v26 = vmul.f32 %v2092_v58, %v1929_v21 }
0x186c   :  { %v1945_v31 = vadd.f32 %v2093_v3, %v1937_v26 }
0x186e   :  { %v1946_v55 = vmax.f32 %v1945_v31, 0.0 }
0x1870   :  { %v1947_v35 = vpack.c.bf16 %v1946_v55, %v1946_v55 }
0x1872   :  { %2302 = vmatmul.mubr.msk.bf16.vlgmr.msra.gmra.mrb[36].mxu0 %vm154_vm6, %v1947_v35 }
0x1945   :  { %v2008_v27 = vpop.f32.mrb[36].mxu0 }
0x1946   :  { %v2009_v23 = vadd.f32 %v2094_v37, %v2008_v27  ;;  %v2303_v5 = vpop.f32.mrb[37].mxu0 }
0x1947   :  { %v2011_v53 = vpop.f32.mrb[38].mxu0 }
0x1948   :  { %v2304_v24 = vpop.f32.mrb[39].mxu0  ;;  %2015 = vst.msk [vmem:[#allocation2] sm:$0x3] %vm2014_vm10, %v2009_v23 }
0x1949   :  { %2610 = shalt.err (!%p2607_p4)
}
0x194a   :  { %s2611_s12 = scalar_lea.hbm %s3295_s13, 32 }
0x194b   :  { %p2612_p5 = scmp.ne.s32.totalorder %s3295_s13, %s2611_s12  ;;  %p2615_p6 = scmp.lt.u32.totalorder %s2611_s12, %s3295_s13 }
0x194d   :  { %p2617_p7 = pnand %p2615_p6, %p2612_p5 }
0x194f   :  { %2620 = shalt.err (!%p2617_p7)
}
0x1950   :  { %2025 = dma.vmem_to_hbm [thread:$0]  %s2023_s19, 32, %s3295_s13, [#allocation3]  }
0x1951   :  { %2621 = dma.done.wait [#allocation3], 32  }
0x1952   :  { %2622 = vsyncadd [#allocation3], 4294967264 }
0x1953   :  { %2029 = vsyncpa [#allocation3], 1 }

</bundles_post_ra>
